<compile_context>
chip_gen: v7x
topology: tpu7x:2x2x1
jax: 0.10.0
libtpu: 0.0.40
codegen_flags: <defaults>
</compile_context>

<pallas_src>
import functools

import jax
import jax.numpy as jnp
from jax import lax
from jax.experimental import pallas as pl
from jax.experimental.pallas import tpu as pltpu

ACTIVITY_COLUMN = 7
NA_FACTOR = 0.006

NN_DIM = 12       # nearest_neibours feature size
NA_DIM = 8        # Na_data feature size (12 + 8 = 20 = Ne_conv_net input)
HIDDEN = 32       # hidden width of the reconstructed origin 2-layer net
OUT_DIM = 3       # origin net output width (columns 1 and 2 are modified)
NE_ROWS = 8       # Ne rows padded to a sublane boundary inside the fused weight
CHUNK = 1024      # lanes per inner compute chunk (keeps intermediates small)


def _round_up(x, m):
    return ((x + m - 1) // m) * m


def _pick_max_block_b():
    """Batch-tile cap per TPU generation (all fit the default scoped VMEM)."""
    try:
        kind = jax.devices()[0].device_kind.lower()
    except Exception:
        kind = ""
    if "v6" in kind or "v7" in kind:
        return 65536          # 32 MiB default scoped VMEM -> ~12 MiB used
    return 32768              # v5e (16 MiB default scoped) / unknown -> ~6 MiB used


def _ne_multi_kernel(nn_ref, na_ref, w_nn_ref, w_na_ref, bne_ref, b1_ref,
                     w2_ref, b2_ref, out_ref, *, chunk, num_chunks, batch, ragged):
    # nn_ref: (tile_b, 12)  na_ref: (tile_b, 8)   batch-major HBM tiles in VMEM
    # out_ref: (num_chunks, 3, chunk)             feature-major, lane-dense
    f32 = jnp.float32
    dn = (((1,), (1,)), ((), ()))                 # contract last dims (rhs "transposed")

    w_nn = w_nn_ref[...]                          # (40, 12)
    w_na = w_na_ref[...]                          # (3, 8)   rows: [Ne-dG, Ne-dS, onehot(7)]
    w2 = w2_ref[...]                              # (3, 32)

    # Hoisted lane-broadcasts (loop-invariant; avoids per-iteration broadcasts).
    bne = jnp.broadcast_to(bne_ref[...], (2, chunk))        # rows: [dG, dS]
    b1 = jnp.broadcast_to(b1_ref[...], (HIDDEN, chunk))
    b2 = jnp.broadcast_to(b2_ref[...], (OUT_DIM, chunk))

    tile_start = pl.program_id(0) * (num_chunks * chunk)

    @pl.loop(0, num_chunks)
    def _chunk(c):
        s = pl.multiple_of(c * chunk, chunk)
        nn_c = nn_ref[pl.ds(s, chunk), :]                   # (chunk, 12)
        na_c = na_ref[pl.ds(s, chunk), :]                   # (chunk, 8)

        # One fused MXU push for both consumers of nn:
        #   rows [0:2)  -> Ne_conv_net nn-half (order [dG, dS])
        #   rows [8:40) -> origin layer-1 (sublane-aligned slice)
        y = lax.dot_general(w_nn, nn_c, dn, preferred_element_type=f32)   # (40, chunk)
        # Na-half of Ne_conv_net + one-hot extraction of Na[:, 7]
        z = lax.dot_general(w_na, na_c, dn, preferred_element_type=f32)   # (3, chunk)

        coeff = y[0:2, :] + z[0:2, :] + bne                 # (2, chunk): [dG-coeff, dS-coeff]
        na7 = z[2:3, :]                                     # (1, chunk): Na[:, 7]
        if ragged:
            lane = lax.broadcasted_iota(jnp.int32, (1, chunk), 1)
            valid = (tile_start + s + lane) < batch
            na7 = jnp.where(valid, na7, 1.0)                # keep log() finite on padded lanes
        scaled = coeff * (jnp.log(na7) * NA_FACTOR)         # rows: [dG additive, dS additive]

        # origin_net: Linear(12->32) -> ReLU -> Linear(32->3)
        h = jnp.maximum(y[NE_ROWS:, :] + b1, 0.0)           # (32, chunk)
        res = jnp.dot(w2, h, preferred_element_type=f32) + b2            # (3, chunk)

        # result[1] += dG ; result[2] += dS   (direct row stores, no select)
        out_ref[c, 0:1, :] = res[0:1, :]
        out_ref[c, 1:3, :] = res[1:3, :] + scaled


def ne_multi_2layer_forward(nearest_neibours, na_data, params, *,
                            max_block_b=None, chunk=CHUNK):
    """Inputs in PyTorch layout [B, features]; no wrapper-side layout passes."""
    B = nearest_neibours.shape[0]
    assert nearest_neibours.shape[1] == NN_DIM and na_data.shape[1] == NA_DIM

    if max_block_b is None:
        max_block_b = _pick_max_block_b()
    max_block_b = max(chunk, (int(max_block_b) // chunk) * chunk)

    # Aim for >= 2 grid steps when B is large (v7x megacore + pipeline overlap);
    # tiles are multiples of CHUNK.
    tb = min(max_block_b, _round_up(max(-(-B // 2), 1), chunk))
    num_chunks = tb // chunk
    grid_steps = pl.cdiv(B, tb)
    nc_total = pl.cdiv(B, chunk)          # chunks actually present in the output array
    ragged = (B % tb) != 0

    nn_in = nearest_neibours.astype(jnp.float32)
    na_in = na_data.astype(jnp.float32)

    batch_map = lambda i: (i, 0)
    const_map = lambda i: (0, 0)

    out = pl.pallas_call(
        functools.partial(_ne_multi_kernel, chunk=chunk, num_chunks=num_chunks,
                          batch=B, ragged=ragged),
        out_shape=jax.ShapeDtypeStruct((nc_total, OUT_DIM, chunk), jnp.float32),
        grid=(grid_steps,),
        in_specs=[
            pl.BlockSpec((tb, NN_DIM), batch_map),                  # nn  (tb, 12)
            pl.BlockSpec((tb, NA_DIM), batch_map),                  # na  (tb, 8)
            pl.BlockSpec((NE_ROWS + HIDDEN, NN_DIM), const_map),    # fused W (40, 12)
            pl.BlockSpec((3, NA_DIM), const_map),                   # W_ne_na + onehot (3, 8)
            pl.BlockSpec((2, 1), const_map),                        # b_ne (2, 1)
            pl.BlockSpec((HIDDEN, 1), const_map),                   # b1 (32, 1)
            pl.BlockSpec((OUT_DIM, HIDDEN), const_map),             # W2 (3, 32)
            pl.BlockSpec((OUT_DIM, 1), const_map),                  # b2 (3, 1)
        ],
        out_specs=pl.BlockSpec((num_chunks, OUT_DIM, chunk), lambda i: (i, 0, 0)),
        compiler_params=pltpu.CompilerParams(dimension_semantics=("parallel",)),
    )(nn_in, na_in,
      params["w_nn"], params["w_na"], params["bne"],
      params["b1"], params["w2"], params["b2"])

    # (nc, 3, chunk) -> (B, 3): one small XLA pass over the 12 B/element output.
    return jnp.swapaxes(out, 1, 2).reshape(nc_total * chunk, OUT_DIM)[:B]


def init_params(key):
    """Deterministic PyTorch-Linear-style init (uniform +-1/sqrt(fan_in))."""
    ks = jax.random.split(key, 6)

    def lin(kw, kb, fan_in, fan_out):
        bound = 1.0 / jnp.sqrt(float(fan_in))
        w = jax.random.uniform(kw, (fan_out, fan_in), jnp.float32, -bound, bound)
        b = jax.random.uniform(kb, (fan_out,), jnp.float32, -bound, bound)
        return w, b

    w_ne, b_ne = lin(ks[0], ks[1], NN_DIM + NA_DIM, 2)    # Ne_conv_net.fc : (2, 20)
    w1, b1 = lin(ks[2], ks[3], NN_DIM, HIDDEN)            # origin layer 1 : (32, 12)
    w2, b2 = lin(ks[4], ks[5], HIDDEN, OUT_DIM)           # origin layer 2 : (3, 32)

    # Fused feature-major nn weight: rows 0/1 = Ne nn-half in [dG, dS] order so the
    # additive rows line up with output rows 1/2; rows [2:8) zero pad (sublane
    # alignment); rows [8:40) = origin layer-1.
    w_nn = jnp.zeros((NE_ROWS + HIDDEN, NN_DIM), jnp.float32)
    w_nn = w_nn.at[0, :].set(w_ne[1, :NN_DIM])
    w_nn = w_nn.at[1, :].set(w_ne[0, :NN_DIM])
    w_nn = w_nn.at[NE_ROWS:, :].set(w1)

    # Na-side weight with a fused one-hot row that extracts Na[:, ACTIVITY_COLUMN].
    w_na = jnp.zeros((3, NA_DIM), jnp.float32)
    w_na = w_na.at[0, :].set(w_ne[1, NN_DIM:])
    w_na = w_na.at[1, :].set(w_ne[0, NN_DIM:])
    w_na = w_na.at[2, ACTIVITY_COLUMN].set(1.0)

    bne = jnp.stack([b_ne[1], b_ne[0]]).reshape(2, 1)     # [dG, dS] order

    return {
        # kernel-packed operands
        "w_nn": w_nn,                          # (40, 12)
        "w_na": w_na,                          # (3, 8)
        "bne": bne,                            # (2, 1)
        "b1": b1.reshape(HIDDEN, 1),
        "w2": w2,                              # (3, 32)
        "b2": b2.reshape(OUT_DIM, 1),
        # plain copies kept only for the pure-JAX reference check
        "_wne": w_ne, "_bne": b_ne, "_w1": w1, "_b1": b1, "_w2": w2, "_b2": b2,
    }


def _reference(nn_x, na_x, p):
    """Pure-JAX reference of the same forward (batch-major), for correctness."""
    coeff = nn_x @ p["_wne"][:, :NN_DIM].T + na_x @ p["_wne"][:, NN_DIM:].T + p["_bne"]
    log_na = jnp.log(na_x[:, ACTIVITY_COLUMN])
    dS = coeff[:, 0] * log_na * NA_FACTOR
    dG = coeff[:, 1] * log_na * NA_FACTOR
    h = jnp.maximum(nn_x @ p["_w1"].T + p["_b1"], 0.0)
    res = h @ p["_w2"].T + p["_b2"]
    res = res.at[:, 2].add(dS)
    res = res.at[:, 1].add(dG)
    return res


if __name__ == "__main__":
    key = jax.random.PRNGKey(0)
    k_par, k_nn, k_na = jax.random.split(key, 3)

    B = 8
    params = init_params(k_par)
    nearest_neibours = jax.random.normal(k_nn, (B, NN_DIM), jnp.float32)
    # Na_data must be strictly positive (column 7 goes through log)
    na_data = jax.random.uniform(k_na, (B, NA_DIM), jnp.float32, 0.5, 1.5)

    out = ne_multi_2layer_forward(nearest_neibours, na_data, params)
    out = jax.block_until_ready(out)

    ref = _reference(nearest_neibours, na_data, params)
    assert out.shape == (B, OUT_DIM)
    assert bool(jnp.all(jnp.isfinite(out)))
    assert bool(jnp.allclose(out, ref, atol=1e-5, rtol=1e-5))

    print("KERNEL_OK")
</pallas_src>

<mosaic_0001>
module attributes {stable_mosaic.version = 11 : i64} {
  func.func @_ne_multi_kernel(%arg0: i32, %arg1: memref<1024x12xf32, #tpu.memory_space<vmem>>, %arg2: memref<1024x8xf32, #tpu.memory_space<vmem>>, %arg3: memref<40x12xf32, #tpu.memory_space<vmem>>, %arg4: memref<3x8xf32, #tpu.memory_space<vmem>>, %arg5: memref<2x1xf32, #tpu.memory_space<vmem>>, %arg6: memref<32x1xf32, #tpu.memory_space<vmem>>, %arg7: memref<3x32xf32, #tpu.memory_space<vmem>>, %arg8: memref<3x1xf32, #tpu.memory_space<vmem>>, %arg9: memref<1x3x1024xf32, #tpu.memory_space<vmem>>) attributes {dimension_semantics = [#tpu.dimension_semantics<parallel>], iteration_bounds = array<i64: 1>, scalar_prefetch = 0 : i64, scratch_operands = 0 : i64, tpu.core_type = #tpu.core_type<tc>, window_params = [{transform_indices = @transform_0, window_bounds = array<i64: 1024, 12>}, {transform_indices = @transform_1, window_bounds = array<i64: 1024, 8>}, {pipeline_mode = #tpu.pipeline_mode<synchronous>, transform_indices = @transform_2, window_bounds = array<i64: 40, 12>}, {pipeline_mode = #tpu.pipeline_mode<synchronous>, transform_indices = @transform_3, window_bounds = array<i64: 3, 8>}, {pipeline_mode = #tpu.pipeline_mode<synchronous>, transform_indices = @transform_4, window_bounds = array<i64: 2, 1>}, {pipeline_mode = #tpu.pipeline_mode<synchronous>, transform_indices = @transform_5, window_bounds = array<i64: 32, 1>}, {pipeline_mode = #tpu.pipeline_mode<synchronous>, transform_indices = @transform_6, window_bounds = array<i64: 3, 32>}, {pipeline_mode = #tpu.pipeline_mode<synchronous>, transform_indices = @transform_7, window_bounds = array<i64: 3, 1>}, {transform_indices = @transform_8, window_bounds = array<i64: 1, 3, 1024>}]} {
    %c0 = arith.constant 0 : index
    %c0_0 = arith.constant 0 : index
    %0 = vector.load %arg3[%c0, %c0_0] : memref<40x12xf32, #tpu.memory_space<vmem>>, vector<40x12xf32>
    %c0_1 = arith.constant 0 : index
    %c0_2 = arith.constant 0 : index
    %1 = vector.load %arg4[%c0_1, %c0_2] : memref<3x8xf32, #tpu.memory_space<vmem>>, vector<3x8xf32>
    %c0_3 = arith.constant 0 : index
    %c0_4 = arith.constant 0 : index
    %2 = vector.load %arg7[%c0_3, %c0_4] : memref<3x32xf32, #tpu.memory_space<vmem>>, vector<3x32xf32>
    %c0_5 = arith.constant 0 : index
    %c0_6 = arith.constant 0 : index
    %3 = vector.load %arg5[%c0_5, %c0_6] : memref<2x1xf32, #tpu.memory_space<vmem>>, vector<2x1xf32>
    %4 = vector.shape_cast %3 : vector<2x1xf32> to vector<2x1xf32>
    %5 = vector.broadcast %4 : vector<2x1xf32> to vector<2x1024xf32>
    %c0_7 = arith.constant 0 : index
    %c0_8 = arith.constant 0 : index
    %6 = vector.load %arg6[%c0_7, %c0_8] : memref<32x1xf32, #tpu.memory_space<vmem>>, vector<32x1xf32>
    %7 = vector.shape_cast %6 : vector<32x1xf32> to vector<32x1xf32>
    %8 = vector.broadcast %7 : vector<32x1xf32> to vector<32x1024xf32>
    %c0_9 = arith.constant 0 : index
    %c0_10 = arith.constant 0 : index
    %9 = vector.load %arg8[%c0_9, %c0_10] : memref<3x1xf32, #tpu.memory_space<vmem>>, vector<3x1xf32>
    %10 = vector.shape_cast %9 : vector<3x1xf32> to vector<3x1xf32>
    %11 = vector.broadcast %10 : vector<3x1xf32> to vector<3x1024xf32>
    %c1024_i32 = arith.constant 1024 : i32
    %12 = arith.muli %arg0, %c1024_i32 : i32
    %c0_i32 = arith.constant 0 : i32
    %c1_i32 = arith.constant 1 : i32
    %13 = arith.muli %c0_i32, %c1_i32 : i32
    %c0_i32_11 = arith.constant 0 : i32
    %14 = arith.addi %c0_i32_11, %13 : i32
    %c1024_i32_12 = arith.constant 1024 : i32
    %15 = arith.muli %14, %c1024_i32_12 : i32
    %16 = tpu.assume_multiple %15, 1024 : i32
    %17 = arith.index_cast %16 : i32 to index
    %c0_13 = arith.constant 0 : index
    %18 = vector.load %arg1[%17, %c0_13] : memref<1024x12xf32, #tpu.memory_space<vmem>>, vector<1024x12xf32>
    %19 = arith.index_cast %16 : i32 to index
    %c0_14 = arith.constant 0 : index
    %20 = vector.load %arg2[%19, %c0_14] : memref<1024x8xf32, #tpu.memory_space<vmem>>, vector<1024x8xf32>
    %cst = arith.constant dense<0.000000e+00> : vector<40x1024xf32>
    %21 = tpu.matmul %0, %18, %cst {dimension_numbers = #tpu.dot_dimension_numbers<[1], [1], [0], [0], [0, 0, 1, 0], [], []>} : vector<40x12xf32>, vector<1024x12xf32>, vector<40x1024xf32> -> vector<40x1024xf32>
    %cst_15 = arith.constant dense<0.000000e+00> : vector<3x1024xf32>
    %22 = tpu.matmul %1, %20, %cst_15 {dimension_numbers = #tpu.dot_dimension_numbers<[1], [1], [0], [0], [0, 0, 1, 0], [], []>} : vector<3x8xf32>, vector<1024x8xf32>, vector<3x1024xf32> -> vector<3x1024xf32>
    %23 = vector.extract_strided_slice %21 {offsets = [0, 0], sizes = [2, 1024], strides = [1, 1]} : vector<40x1024xf32> to vector<2x1024xf32>
    %24 = vector.extract_strided_slice %22 {offsets = [0, 0], sizes = [2, 1024], strides = [1, 1]} : vector<3x1024xf32> to vector<2x1024xf32>
    %25 = arith.addf %23, %24 : vector<2x1024xf32>
    %26 = arith.addf %25, %5 : vector<2x1024xf32>
    %27 = vector.extract_strided_slice %22 {offsets = [2, 0], sizes = [1, 1024], strides = [1, 1]} : vector<3x1024xf32> to vector<1x1024xf32>
    %28 = tpu.iota {dimensions = array<i32: 1>} : vector<1x1024xi32>
    %29 = arith.addi %12, %16 : i32
    %30 = vector.broadcast %29 : i32 to vector<1x1024xi32>
    %31 = arith.addi %30, %28 : vector<1x1024xi32>
    %c8_i32 = arith.constant 8 : i32
    %32 = vector.broadcast %c8_i32 : i32 to vector<1x1024xi32>
    %33 = arith.cmpi slt, %31, %32 : vector<1x1024xi32>
    %cst_16 = arith.constant 1.000000e+00 : f32
    %34 = vector.broadcast %cst_16 : f32 to vector<1x1024xf32>
    %35 = arith.select %33, %27, %34 : vector<1x1024xi1>, vector<1x1024xf32>
    %36 = math.log %35 : vector<1x1024xf32>
    %cst_17 = arith.constant 6.000000e-03 : f32
    %37 = vector.broadcast %cst_17 : f32 to vector<1x1024xf32>
    %38 = arith.mulf %36, %37 : vector<1x1024xf32>
    %39 = vector.broadcast %38 : vector<1x1024xf32> to vector<2x1024xf32>
    %40 = arith.mulf %26, %39 : vector<2x1024xf32>
    %41 = vector.extract_strided_slice %21 {offsets = [8, 0], sizes = [32, 1024], strides = [1, 1]} : vector<40x1024xf32> to vector<32x1024xf32>
    %42 = arith.addf %41, %8 : vector<32x1024xf32>
    %cst_18 = arith.constant 0.000000e+00 : f32
    %43 = vector.broadcast %cst_18 : f32 to vector<32x1024xf32>
    %44 = arith.maximumf %42, %43 : vector<32x1024xf32>
    %cst_19 = arith.constant dense<0.000000e+00> : vector<3x1024xf32>
    %45 = tpu.matmul %2, %44, %cst_19 {dimension_numbers = #tpu.dot_dimension_numbers<[1], [0], [0], [1], [0, 0, 1, 1], [], []>} : vector<3x32xf32>, vector<32x1024xf32>, vector<3x1024xf32> -> vector<3x1024xf32>
    %46 = arith.addf %45, %11 : vector<3x1024xf32>
    %47 = vector.extract_strided_slice %46 {offsets = [0, 0], sizes = [1, 1024], strides = [1, 1]} : vector<3x1024xf32> to vector<1x1024xf32>
    %48 = arith.index_cast %14 : i32 to index
    %c0_20 = arith.constant 0 : index
    %c0_21 = arith.constant 0 : index
    %49 = vector.load %arg9[%48, %c0_20, %c0_21] : memref<1x3x1024xf32, #tpu.memory_space<vmem>>, vector<1x1x1024xf32>
    %50 = vector.shape_cast %49 : vector<1x1x1024xf32> to vector<1x1024xf32>
    %51 = vector.shape_cast %47 : vector<1x1024xf32> to vector<1x1x1024xf32>
    tpu.vector_store %arg9[%48, %c0_20, %c0_21], %51 {strides = array<i32>} : memref<1x3x1024xf32, #tpu.memory_space<vmem>>, vector<1x1x1024xf32>,
    %52 = vector.extract_strided_slice %46 {offsets = [1, 0], sizes = [2, 1024], strides = [1, 1]} : vector<3x1024xf32> to vector<2x1024xf32>
    %53 = arith.addf %52, %40 : vector<2x1024xf32>
    %54 = arith.index_cast %14 : i32 to index
    %c1 = arith.constant 1 : index
    %c0_22 = arith.constant 0 : index
    %55 = vector.load %arg9[%54, %c1, %c0_22] : memref<1x3x1024xf32, #tpu.memory_space<vmem>>, vector<1x2x1024xf32>
    %56 = vector.shape_cast %55 : vector<1x2x1024xf32> to vector<2x1024xf32>
    %57 = vector.shape_cast %53 : vector<2x1024xf32> to vector<1x2x1024xf32>
    tpu.vector_store %arg9[%54, %c1, %c0_22], %57 {strides = array<i32>} : memref<1x3x1024xf32, #tpu.memory_space<vmem>>, vector<1x2x1024xf32>,
    %c1_i32_23 = arith.constant 1 : i32
    return
  }
  func.func @transform_0(%arg0: i32) -> (i32, i32) {
    %c0_i32 = arith.constant 0 : i32
    %c0_i32_0 = arith.constant 0 : i32
    return %arg0, %c0_i32 : i32, i32
  }
  func.func @transform_1(%arg0: i32) -> (i32, i32) {
    %c0_i32 = arith.constant 0 : i32
    %c0_i32_0 = arith.constant 0 : i32
    return %arg0, %c0_i32 : i32, i32
  }
  func.func @transform_2(%arg0: i32) -> (i32, i32) {
    %c0_i32 = arith.constant 0 : i32
    %c0_i32_0 = arith.constant 0 : i32
    %c0_i32_1 = arith.constant 0 : i32
    return %c0_i32, %c0_i32_0 : i32, i32
  }
  func.func @transform_3(%arg0: i32) -> (i32, i32) {
    %c0_i32 = arith.constant 0 : i32
    %c0_i32_0 = arith.constant 0 : i32
    %c0_i32_1 = arith.constant 0 : i32
    return %c0_i32, %c0_i32_0 : i32, i32
  }
  func.func @transform_4(%arg0: i32) -> (i32, i32) {
    %c0_i32 = arith.constant 0 : i32
    %c0_i32_0 = arith.constant 0 : i32
    %c0_i32_1 = arith.constant 0 : i32
    return %c0_i32, %c0_i32_0 : i32, i32
  }
  func.func @transform_5(%arg0: i32) -> (i32, i32) {
    %c0_i32 = arith.constant 0 : i32
    %c0_i32_0 = arith.constant 0 : i32
    %c0_i32_1 = arith.constant 0 : i32
    return %c0_i32, %c0_i32_0 : i32, i32
  }
  func.func @transform_6(%arg0: i32) -> (i32, i32) {
    %c0_i32 = arith.constant 0 : i32
    %c0_i32_0 = arith.constant 0 : i32
    %c0_i32_1 = arith.constant 0 : i32
    return %c0_i32, %c0_i32_0 : i32, i32
  }
  func.func @transform_7(%arg0: i32) -> (i32, i32) {
    %c0_i32 = arith.constant 0 : i32
    %c0_i32_0 = arith.constant 0 : i32
    %c0_i32_1 = arith.constant 0 : i32
    return %c0_i32, %c0_i32_0 : i32, i32
  }
  func.func @transform_8(%arg0: i32) -> (i32, i32, i32) {
    %c0_i32 = arith.constant 0 : i32
    %c0_i32_0 = arith.constant 0 : i32
    %c0_i32_1 = arith.constant 0 : i32
    return %arg0, %c0_i32, %c0_i32_0 : i32, i32, i32
  }
}

</mosaic_0001>

<bundles_post_ra>
// kernel: tpu_custom_call.1
= control target key start
LH: loop header
LB: loop body
LE: loop exit
PB: predicated region body
PF: predicated region fallthrough
CT: control target
= control target key end

     0   :  { %vm329_vm0 = vcmask 97280   ;;  %vm1109_vm2 = vcmask 64512   ;;  %vm1960_vm4 = vcmask 261120   ;;  %s4687_s0 = inlined_call_operand.vmem [shape: f32[8,12], index: 0, kind: input, shape index: {}]   ;;  %s4688_s2 = inlined_call_operand.vmem [shape: f32[40,12], index: 2, kind: input, shape index: {}]   ;;  %s4689_s5 = inlined_call_operand.vmem [shape: f32[32,1], index: 5, kind: input, shape index: {}]   ;;  %s4690_s7 = inlined_call_operand.vmem [shape: f32[3,1], index: 7, kind: input, shape index: {}]   ;;  %s4691_s4 = inlined_call_operand.vmem [shape: f32[2,1], index: 4, kind: input, shape index: {}]   ;;  %s4692_s1 = inlined_call_operand.vmem [shape: f32[8,8], index: 1, kind: input, shape index: {}]   ;;  %s4693_s3 = inlined_call_operand.vmem [shape: f32[3,8], index: 3, kind: input, shape index: {}]   ;;  %s4694_s6 = inlined_call_operand.vmem [shape: f32[3,32], index: 6, kind: input, shape index: {}]   ;;  %s4695_s8 = inlined_call_operand.vmem [shape: f32[1,3,1024], index: 8, kind: output, shape index: {}]  }
   0x1   :  { %v89_v0 = vld [vmem:[%s4687_s0 + $0x80] sm:$0xff]  ;;  %v90_v1 = vld [vmem:[%s4687_s0 + $0x88] sm:$0xff]  ;;  %vm3436_vm1 = vmpackc.low %vm329_vm0, %vm329_vm0 }
   0x2   :  { %v2951_v3 = vpack.c.bf16 %v90_v1, %v89_v0  ;;  %v121_v4 = vld [vmem:[%s4687_s0 + $0x180] sm:$0xff]  ;;  %v122_v5 = vld [vmem:[%s4687_s0 + $0x188] sm:$0xff]  ;;  %v91_v13 = vld [vmem:[%s4687_s0 + $0x90] sm:$0xff]  ;;  %v3380_v0 = vmov 0  }
   0x3   :  { %v73_v6 = vld [vmem:[%s4687_s0] sm:$0xff]  ;;  %v2999_v7 = vpack.c.bf16 %v122_v5, %v121_v4  ;;  %v74_v8 = vld [vmem:[%s4687_s0 + $0x8] sm:$0xff]  ;;  %v92_v14 = vld [vmem:[%s4687_s0 + $0x98] sm:$0xff]  ;;  %3376 = vset.pattern.permute.xlu0 %v3380_v0  ;;  %3377 = vset.pattern.permute.xlu1 %v3380_v0 }
   0x4   :  { %v105_v9 = vld [vmem:[%s4687_s0 + $0x100] sm:$0xff]  ;;  %v106_v10 = vld [vmem:[%s4687_s0 + $0x108] sm:$0xff]  ;;  %2953 = vmatprep.subr.msk.bf16.mxu0 %vm3436_vm1, %v2951_v3  ;;  %v2954_v11 = vpack.c.bf16 %v74_v8, %v73_v6  ;;  %v123_v15 = vld [vmem:[%s4687_s0 + $0x190] sm:$0xff]  ;;  %v2957_v16 = vpack.c.bf16 %v92_v14, %v91_v13 }
   0x5   :  { %v3002_v12 = vpack.c.bf16 %v106_v10, %v105_v9  ;;  %3001 = vmatprep.subr.msk.bf16.mxu1 %vm3436_vm1, %v2999_v7  ;;  %v124_v17 = vld [vmem:[%s4687_s0 + $0x198] sm:$0xff]  ;;  %v75_v19 = vld [vmem:[%s4687_s0 + $0x10] sm:$0xff]  ;;  %v93_v23 = vld [vmem:[%s4687_s0 + $0xa0] sm:$0xff] }
   0x6   :  { %2956 = vmatpush3.bf16.xpose.msk.msra.mxu0 %vm3436_vm1, %v2954_v11  ;;  %v3005_v18 = vpack.c.bf16 %v124_v17, %v123_v15  ;;  %v76_v20 = vld [vmem:[%s4687_s0 + $0x18] sm:$0xff]  ;;  %v107_v21 = vld [vmem:[%s4687_s0 + $0x110] sm:$0xff]  ;;  %v94_v24 = vld [vmem:[%s4687_s0 + $0xa8] sm:$0xff] }
   0x7   :  { %3004 = vmatpush3.bf16.xpose.msk.msra.mxu1 %vm3436_vm1, %v3002_v12  ;;  %2959 = vmatprep.subr.msk.bf16.mxu0 %vm3436_vm1, %v2957_v16  ;;  %v108_v22 = vld [vmem:[%s4687_s0 + $0x118] sm:$0xff]  ;;  %v125_v25 = vld [vmem:[%s4687_s0 + $0x1a0] sm:$0xff]  ;;  %v126_v26 = vld [vmem:[%s4687_s0 + $0x1a8] sm:$0xff]  ;;  %v2960_v27 = vpack.c.bf16 %v76_v20, %v75_v19  ;;  %v2963_v29 = vpack.c.bf16 %v94_v24, %v93_v23 }
   0x8   :  { %3007 = vmatprep.subr.msk.bf16.mxu1 %vm3436_vm1, %v3005_v18  ;;  %v3008_v28 = vpack.c.bf16 %v108_v22, %v107_v21  ;;  %v3011_v30 = vpack.c.bf16 %v126_v26, %v125_v25  ;;  %v77_v31 = vld [vmem:[%s4687_s0 + $0x20] sm:$0xff]  ;;  %v78_v32 = vld [vmem:[%s4687_s0 + $0x28] sm:$0xff]  ;;  %v95_v35 = vld [vmem:[%s4687_s0 + $0xb0] sm:$0xff] }
   0x9   :  { %v109_v33 = vld [vmem:[%s4687_s0 + $0x120] sm:$0xff]  ;;  %v110_v34 = vld [vmem:[%s4687_s0 + $0x128] sm:$0xff]  ;;  %v96_v36 = vld [vmem:[%s4687_s0 + $0xb8] sm:$0xff]  ;;  %v2966_v39 = vpack.c.bf16 %v78_v32, %v77_v31 }
   0xa   :  { %v127_v37 = vld [vmem:[%s4687_s0 + $0x1b0] sm:$0xff]  ;;  %v128_v38 = vld [vmem:[%s4687_s0 + $0x1b8] sm:$0xff]  ;;  %v3014_v40 = vpack.c.bf16 %v110_v34, %v109_v33  ;;  %v2969_v41 = vpack.c.bf16 %v96_v36, %v95_v35  ;;  %v3551_v45 = vld [vmem:[%s4688_s2] sm:$0xff] }
   0xb   :  { %v3017_v42 = vpack.c.bf16 %v128_v38, %v127_v37  ;;  %v79_v43 = vld [vmem:[%s4687_s0 + $0x30] sm:$0xff]  ;;  %v80_v44 = vld [vmem:[%s4687_s0 + $0x38] sm:$0xff]  ;;  %v97_v48 = vld [vmem:[%s4687_s0 + $0xc0] sm:$0xff]  ;;  %2679 = vmatprep.mubr.msk.f32.mxu0 %vm329_vm0, %v3551_v45  ;;  %2721 = vmatprep.mubr.msk.f32.mxu1 %vm329_vm0, %v3551_v45 }
   0xc   :  { %v111_v46 = vld [vmem:[%s4687_s0 + $0x130] sm:$0xff]  ;;  %v112_v47 = vld [vmem:[%s4687_s0 + $0x138] sm:$0xff]  ;;  %v98_v49 = vld [vmem:[%s4687_s0 + $0xc8] sm:$0xff]  ;;  %v2972_v52 = vpack.c.bf16 %v80_v44, %v79_v43 }
   0xd   :  { %v129_v50 = vld [vmem:[%s4687_s0 + $0x1c0] sm:$0xff]  ;;  %v130_v51 = vld [vmem:[%s4687_s0 + $0x1c8] sm:$0xff]  ;;  %v3020_v53 = vpack.c.bf16 %v112_v47, %v111_v46  ;;  %v2975_v54 = vpack.c.bf16 %v98_v49, %v97_v48  ;;  %v99_v60 = vld [vmem:[%s4687_s0 + $0xd0] sm:$0xff] }
   0xe   :  { %2962 = vmatpush3.bf16.xpose.msk.msra.mxu0 %vm3436_vm1, %v2960_v27  ;;  %v3023_v55 = vpack.c.bf16 %v130_v51, %v129_v50  ;;  %v81_v56 = vld [vmem:[%s4687_s0 + $0x40] sm:$0xff]  ;;  %v82_v57 = vld [vmem:[%s4687_s0 + $0x48] sm:$0xff]  ;;  %v100_v61 = vld [vmem:[%s4687_s0 + $0xd8] sm:$0xff] }
   0xf   :  { %3010 = vmatpush3.bf16.xpose.msk.msra.mxu1 %vm3436_vm1, %v3008_v28  ;;  %2965 = vmatprep.subr.msk.bf16.mxu0 %vm3436_vm1, %v2963_v29  ;;  %v113_v58 = vld [vmem:[%s4687_s0 + $0x140] sm:$0xff]  ;;  %v114_v59 = vld [vmem:[%s4687_s0 + $0x148] sm:$0xff]  ;;  %v131_v62 = vld [vmem:[%s4687_s0 + $0x1d0] sm:$0xff]  ;;  %v2978_v1 = vpack.c.bf16 %v82_v57, %v81_v56  ;;  %v2981_v4 = vpack.c.bf16 %v100_v61, %v99_v60 }
  0x10   :  { %3013 = vmatprep.subr.msk.bf16.mxu1 %vm3436_vm1, %v3011_v30  ;;  %v132_v63 = vld [vmem:[%s4687_s0 + $0x1d8] sm:$0xff]  ;;  %v3026_v3 = vpack.c.bf16 %v114_v59, %v113_v58  ;;  %v83_v6 = vld [vmem:[%s4687_s0 + $0x50] sm:$0xff]  ;;  %v101_v10 = vld [vmem:[%s4687_s0 + $0xe0] sm:$0xff] }
  0x11   :  { %v3029_v5 = vpack.c.bf16 %v132_v63, %v131_v62  ;;  %v84_v7 = vld [vmem:[%s4687_s0 + $0x58] sm:$0xff]  ;;  %v115_v8 = vld [vmem:[%s4687_s0 + $0x150] sm:$0xff]  ;;  %v102_v11 = vld [vmem:[%s4687_s0 + $0xe8] sm:$0xff] }
  0x12   :  { %v116_v9 = vld [vmem:[%s4687_s0 + $0x158] sm:$0xff]  ;;  %v133_v12 = vld [vmem:[%s4687_s0 + $0x1e0] sm:$0xff]  ;;  %v134_v13 = vld [vmem:[%s4687_s0 + $0x1e8] sm:$0xff]  ;;  %v2984_v14 = vpack.c.bf16 %v84_v7, %v83_v6  ;;  %v2987_v16 = vpack.c.bf16 %v102_v11, %v101_v10 }
  0x13   :  { %v3032_v15 = vpack.c.bf16 %v116_v9, %v115_v8  ;;  %v3035_v17 = vpack.c.bf16 %v134_v13, %v133_v12  ;;  %v85_v18 = vld [vmem:[%s4687_s0 + $0x60] sm:$0xff]  ;;  %v86_v19 = vld [vmem:[%s4687_s0 + $0x68] sm:$0xff]  ;;  %v103_v22 = vld [vmem:[%s4687_s0 + $0xf0] sm:$0xff] }
  0x14   :  { %v117_v20 = vld [vmem:[%s4687_s0 + $0x160] sm:$0xff]  ;;  %v118_v21 = vld [vmem:[%s4687_s0 + $0x168] sm:$0xff]  ;;  %v104_v23 = vld [vmem:[%s4687_s0 + $0xf8] sm:$0xff]  ;;  %v2990_v26 = vpack.c.bf16 %v86_v19, %v85_v18 }
  0x15   :  { %v135_v24 = vld [vmem:[%s4687_s0 + $0x1f0] sm:$0xff]  ;;  %v136_v25 = vld [vmem:[%s4687_s0 + $0x1f8] sm:$0xff]  ;;  %v3038_v27 = vpack.c.bf16 %v118_v21, %v117_v20  ;;  %v2993_v28 = vpack.c.bf16 %v104_v23, %v103_v22  ;;  %v153_v34 = vld [vmem:[%s4687_s0 + $0x280] sm:$0xff] }
  0x16   :  { %2968 = vmatpush3.bf16.xpose.msk.msra.mxu0 %vm3436_vm1, %v2966_v39  ;;  %v3041_v29 = vpack.c.bf16 %v136_v25, %v135_v24  ;;  %v87_v30 = vld [vmem:[%s4687_s0 + $0x70] sm:$0xff]  ;;  %v88_v31 = vld [vmem:[%s4687_s0 + $0x78] sm:$0xff]  ;;  %v154_v35 = vld [vmem:[%s4687_s0 + $0x288] sm:$0xff] }
  0x17   :  { %3016 = vmatpush3.bf16.xpose.msk.msra.mxu1 %vm3436_vm1, %v3014_v40  ;;  %2971 = vmatprep.subr.msk.bf16.mxu0 %vm3436_vm1, %v2969_v41  ;;  %v119_v32 = vld [vmem:[%s4687_s0 + $0x170] sm:$0xff]  ;;  %v120_v33 = vld [vmem:[%s4687_s0 + $0x178] sm:$0xff]  ;;  %v185_v36 = vld [vmem:[%s4687_s0 + $0x380] sm:$0xff]  ;;  %v2996_v39 = vpack.c.bf16 %v88_v31, %v87_v30  ;;  %v3047_v43 = vpack.c.bf16 %v154_v35, %v153_v34 }
  0x18   :  { %3019 = vmatprep.subr.msk.bf16.mxu1 %vm3436_vm1, %v3017_v42  ;;  %v186_v37 = vld [vmem:[%s4687_s0 + $0x388] sm:$0xff]  ;;  %v42_v38 = vld [vmem:[%s4689_s5] sm:$0xff]  ;;  %v3044_v40 = vpack.c.bf16 %v120_v33, %v119_v32  ;;  %v44_v41 = vld [vmem:[%s4689_s5 + $0x10] sm:$0xff] }
  0x19   :  { %48 = vperm.xlu0 %3376, %v42_v38   ;;  %v43_v42 = vld [vmem:[%s4689_s5 + $0x8] sm:$0xff]  ;;  %v3095_v44 = vpack.c.bf16 %v186_v37, %v185_v36  ;;  %58 = vperm.xlu1 %3377, %v44_v41   ;;  %v45_v46 = vld [vmem:[%s4689_s5 + $0x18] sm:$0xff]  ;;  %v137_v47 = vld [vmem:[%s4687_s0 + $0x200] sm:$0xff] }
  0x1a   :  { %v138_v48 = vld [vmem:[%s4687_s0 + $0x208] sm:$0xff]  ;;  %v169_v49 = vld [vmem:[%s4687_s0 + $0x300] sm:$0xff]  ;;  %v155_v51 = vld [vmem:[%s4687_s0 + $0x290] sm:$0xff] }
  0x1b   :  { %v170_v50 = vld [vmem:[%s4687_s0 + $0x308] sm:$0xff]  ;;  %v3767_v60 = vld [vmem:[%s4688_s2 + $0x10] sm:$0xff]  ;;  %v140_v62 = vld [vmem:[%s4687_s0 + $0x218] sm:$0xff] }
  0x1c   :  { %v3098_v56 = vpack.c.bf16 %v170_v50, %v169_v49  ;;  %v3754_v57 = vld [vmem:[%s4688_s2 + $0x8] sm:$0xff]  ;;  %v139_v61 = vld [vmem:[%s4687_s0 + $0x210] sm:$0xff]  ;;  %v172_v0 = vld [vmem:[%s4687_s0 + $0x318] sm:$0xff] }
  0x1d   :  { %53 = vperm.xlu0 %3376, %v43_v42   ;;  %63 = vperm.xlu1 %3377, %v45_v46   ;;  %v171_v63 = vld [vmem:[%s4687_s0 + $0x310] sm:$0xff]  ;;  %v3056_v6 = vpack.c.bf16 %v140_v62, %v139_v61  ;;  %v3812_v8 = vld [vmem:[%s4688_s2 + $0x18] sm:$0xff]  ;;  %v3825_v11 = vld [vmem:[%s4688_s2 + $0x20] sm:$0xff] }
  0x1e   :  { %2974 = vmatpush3.bf16.xpose.msk.msra.mxu0 %vm3436_vm1, %v2972_v52  ;;  %v156_v52 = vld [vmem:[%s4687_s0 + $0x298] sm:$0xff]  ;;  %v3104_v7 = vpack.c.bf16 %v172_v0, %v171_v63  ;;  %v141_v12 = vld [vmem:[%s4687_s0 + $0x220] sm:$0xff]  ;;  %v142_v13 = vld [vmem:[%s4687_s0 + $0x228] sm:$0xff] }
  0x1f   :  { %3022 = vmatpush3.bf16.xpose.msk.msra.mxu1 %vm3436_vm1, %v3020_v53  ;;  %2977 = vmatprep.subr.msk.bf16.mxu0 %vm3436_vm1, %v2975_v54  ;;  %v187_v53 = vld [vmem:[%s4687_s0 + $0x390] sm:$0xff]  ;;  %v188_v54 = vld [vmem:[%s4687_s0 + $0x398] sm:$0xff]  ;;  %v3053_v58 = vpack.c.bf16 %v156_v52, %v155_v51  ;;  %v3062_v20 = vpack.c.bf16 %v142_v13, %v141_v12  ;;  %v66_v30 = vld [vmem:[%s4690_s7] sm:$0x7] }
  0x20   :  { %3025 = vmatprep.subr.msk.bf16.mxu1 %vm3436_vm1, %v3023_v55  ;;  %v3050_v55 = vpack.c.bf16 %v138_v48, %v137_v47  ;;  %v3101_v59 = vpack.c.bf16 %v188_v54, %v187_v53  ;;  %v191_v18 = vld [vmem:[%s4687_s0 + $0x3b0] sm:$0xff]  ;;  %v192_v19 = vld [vmem:[%s4687_s0 + $0x3b8] sm:$0xff]  ;;  %v193_v31 = vld [vmem:[%s4687_s0 + $0x3c0] sm:$0xff] }
  0x21   :  { %v3113_v23 = vpack.c.bf16 %v192_v19, %v191_v18  ;;  %v143_v24 = vld [vmem:[%s4687_s0 + $0x230] sm:$0xff]  ;;  %v144_v25 = vld [vmem:[%s4687_s0 + $0x238] sm:$0xff]  ;;  %v194_v32 = vld [vmem:[%s4687_s0 + $0x3c8] sm:$0xff]  ;;  %69 = vperm.xlu0 %3376, %v66_v30  }
  0x22   :  { %v36_v33 = vld [vmem:[%s4691_s4] sm:$0x3]  ;;  %v3068_v34 = vpack.c.bf16 %v144_v25, %v143_v24  ;;  %v3119_v37 = vpack.c.bf16 %v194_v32, %v193_v31  ;;  %v178_v41 = vld [vmem:[%s4687_s0 + $0x348] sm:$0xff]  ;;  %v163_v42 = vld [vmem:[%s4687_s0 + $0x2d0] sm:$0xff] }
  0x23   :  { %39 = vperm.xlu1 %3377, %v36_v33   ;;  %v145_v38 = vld [vmem:[%s4687_s0 + $0x240] sm:$0xff]  ;;  %v196_v46 = vld [vmem:[%s4687_s0 + $0x3d8] sm:$0xff]  ;;  %v147_v51 = vld [vmem:[%s4687_s0 + $0x250] sm:$0xff] }
  0x24   :  { %v148_v52 = vld [vmem:[%s4687_s0 + $0x258] sm:$0xff]  ;;  %v179_v53 = vld [vmem:[%s4687_s0 + $0x350] sm:$0xff]  ;;  %vm4043_vm3 = vmpackc.low %vm1109_vm2, %vm1109_vm2 }
  0x25   :  { %v180_v54 = vld [vmem:[%s4687_s0 + $0x358] sm:$0xff]  ;;  %v3080_v61 = vpack.c.bf16 %v148_v52, %v147_v51  ;;  %v183_v18 = vld [vmem:[%s4687_s0 + $0x370] sm:$0xff]  ;;  %v202_v30 = vld [vmem:[%s4692_s1 + $0x8] sm:$0xff] }
  0x26   :  { %2980 = vmatpush3.bf16.xpose.msk.msra.mxu0 %vm3436_vm1, %v2978_v1  ;;  %v157_v1 = vld [vmem:[%s4687_s0 + $0x2a0] sm:$0xff]  ;;  %v3128_v62 = vpack.c.bf16 %v180_v54, %v179_v53  ;;  %v184_v19 = vld [vmem:[%s4687_s0 + $0x378] sm:$0xff]  ;;  %v234_v2 = vld [vmem:[%s4692_s1 + $0x108] sm:$0xff] }
  0x27   :  { %3028 = vmatpush3.bf16.xpose.msk.msra.mxu1 %vm3436_vm1, %v3026_v3  ;;  %2983 = vmatprep.subr.msk.bf16.mxu0 %vm3436_vm1, %v2981_v4  ;;  %v158_v3 = vld [vmem:[%s4687_s0 + $0x2a8] sm:$0xff]  ;;  %v189_v4 = vld [vmem:[%s4687_s0 + $0x3a0] sm:$0xff]  ;;  %v3140_v25 = vpack.c.bf16 %v184_v19, %v183_v18  ;;  %v219_v32 = vld [vmem:[%s4692_s1 + $0x90] sm:$0xff] }
  0x28   :  { %3031 = vmatprep.subr.msk.bf16.mxu1 %vm3436_vm1, %v3029_v5  ;;  %v190_v5 = vld [vmem:[%s4687_s0 + $0x3a8] sm:$0xff]  ;;  %v3059_v9 = vpack.c.bf16 %v158_v3, %v157_v1  ;;  %v149_v1 = vld [vmem:[%s4687_s0 + $0x260] sm:$0xff]  ;;  %v220_v33 = vld [vmem:[%s4692_s1 + $0x98] sm:$0xff] }
  0x29   :  { %v3107_v10 = vpack.c.bf16 %v190_v5, %v189_v4  ;;  %v150_v3 = vld [vmem:[%s4687_s0 + $0x268] sm:$0xff]  ;;  %v181_v4 = vld [vmem:[%s4687_s0 + $0x360] sm:$0xff]  ;;  %v223_v54 = vld [vmem:[%s4692_s1 + $0xb0] sm:$0xff] }
  0x2a   :  { %v182_v5 = vld [vmem:[%s4687_s0 + $0x368] sm:$0xff]  ;;  %v3086_v12 = vpack.c.bf16 %v150_v3, %v149_v1  ;;  %v233_v31 = vld [vmem:[%s4692_s1 + $0x100] sm:$0xff]  ;;  %v208_v1 = vld [vmem:[%s4692_s1 + $0x38] sm:$0xff] }
  0x2b   :  { %v3134_v13 = vpack.c.bf16 %v182_v5, %v181_v4  ;;  %v205_v51 = vld [vmem:[%s4692_s1 + $0x20] sm:$0xff]  ;;  %v206_v52 = vld [vmem:[%s4692_s1 + $0x28] sm:$0xff]  ;;  %v240_v3 = vld [vmem:[%s4692_s1 + $0x138] sm:$0xff] }
  0x2c   :  { %v238_v53 = vld [vmem:[%s4692_s1 + $0x128] sm:$0xff]  ;;  %v225_v4 = vld [vmem:[%s4692_s1 + $0xc0] sm:$0xff]  ;;  %v227_v18 = vld [vmem:[%s4692_s1 + $0xd0] sm:$0xff] }
  0x2d   :  { %v226_v5 = vld [vmem:[%s4692_s1 + $0xc8] sm:$0xff]  ;;  %v228_v19 = vld [vmem:[%s4692_s1 + $0xd8] sm:$0xff] }
  0x2e   :  { %2986 = vmatpush3.bf16.xpose.msk.msra.mxu0 %vm3436_vm1, %v2984_v14  ;;  %v173_v14 = vld [vmem:[%s4687_s0 + $0x320] sm:$0xff] }
  0x2f   :  { %3034 = vmatpush3.bf16.xpose.msk.msra.mxu1 %vm3436_vm1, %v3032_v15  ;;  %2989 = vmatprep.subr.msk.bf16.mxu0 %vm3436_vm1, %v2987_v16  ;;  %v174_v15 = vld [vmem:[%s4687_s0 + $0x328] sm:$0xff]  ;;  %v159_v16 = vld [vmem:[%s4687_s0 + $0x2b0] sm:$0xff] }
  0x30   :  { %3037 = vmatprep.subr.msk.bf16.mxu1 %vm3436_vm1, %v3035_v17  ;;  %v160_v17 = vld [vmem:[%s4687_s0 + $0x2b8] sm:$0xff]  ;;  %v3110_v21 = vpack.c.bf16 %v174_v15, %v173_v14 }
  0x31   :  { %v3065_v22 = vpack.c.bf16 %v160_v17, %v159_v16  ;;  %v151_v16 = vld [vmem:[%s4687_s0 + $0x270] sm:$0xff]  ;;  %v152_v17 = vld [vmem:[%s4687_s0 + $0x278] sm:$0xff] }
  0x32   :  { %v3092_v24 = vpack.c.bf16 %v152_v17, %v151_v16  ;;  %v241_v16 = vld [vmem:[%s4692_s1 + $0x140] sm:$0xff]  ;;  %v242_v17 = vld [vmem:[%s4692_s1 + $0x148] sm:$0xff] }
  0x36   :  { %2992 = vmatpush3.bf16.xpose.msk.msra.mxu0 %vm3436_vm1, %v2990_v26  ;;  %v175_v26 = vld [vmem:[%s4687_s0 + $0x330] sm:$0xff] }
  0x37   :  { %3040 = vmatpush3.bf16.xpose.msk.msra.mxu1 %vm3436_vm1, %v3038_v27  ;;  %2995 = vmatprep.subr.msk.bf16.mxu0 %vm3436_vm1, %v2993_v28  ;;  %v176_v27 = vld [vmem:[%s4687_s0 + $0x338] sm:$0xff]  ;;  %v161_v28 = vld [vmem:[%s4687_s0 + $0x2c0] sm:$0xff] }
  0x38   :  { %3043 = vmatprep.subr.msk.bf16.mxu1 %vm3436_vm1, %v3041_v29  ;;  %v162_v29 = vld [vmem:[%s4687_s0 + $0x2c8] sm:$0xff]  ;;  %v3116_v35 = vpack.c.bf16 %v176_v27, %v175_v26 }
  0x39   :  { %v3071_v36 = vpack.c.bf16 %v162_v29, %v161_v28  ;;  %v201_v29 = vld [vmem:[%s4692_s1] sm:$0xff] }
  0x3e   :  { %2998 = vmatpush3.bf16.xpose.msk.msra.mxu0 %vm3436_vm1, %v2996_v39  ;;  %v146_v39 = vld [vmem:[%s4687_s0 + $0x248] sm:$0xff] }
  0x3f   :  { %3046 = vmatpush3.bf16.xpose.msk.msra.mxu1 %vm3436_vm1, %v3044_v40  ;;  %3049 = vmatprep.subr.msk.bf16.mxu0 %vm3436_vm1, %v3047_v43  ;;  %v177_v40 = vld [vmem:[%s4687_s0 + $0x340] sm:$0xff]  ;;  %v164_v43 = vld [vmem:[%s4687_s0 + $0x2d8] sm:$0xff]  ;;  %v3074_v47 = vpack.c.bf16 %v146_v39, %v145_v38  ;;  %v3149_v38 = vpack.c.bf16 %v220_v33, %v219_v32  ;;  %v262_v33 = vld [vmem:[%s4692_s1 + $0x1e8] sm:$0xff] }
  0x40   :  { %3097 = vmatprep.subr.msk.bf16.mxu1 %vm3436_vm1, %v3095_v44  ;;  %v195_v44 = vld [vmem:[%s4687_s0 + $0x3d0] sm:$0xff]  ;;  %v3122_v48 = vpack.c.bf16 %v178_v41, %v177_v40  ;;  %v3077_v49 = vpack.c.bf16 %v164_v43, %v163_v42  ;;  %v236_v42 = vld [vmem:[%s4692_s1 + $0x118] sm:$0xff]  ;;  %v221_v43 = vld [vmem:[%s4692_s1 + $0xa0] sm:$0xff] }
  0x41   :  { %v3125_v50 = vpack.c.bf16 %v196_v46, %v195_v44  ;;  %v203_v40 = vld [vmem:[%s4692_s1 + $0x10] sm:$0xff]  ;;  %v222_v44 = vld [vmem:[%s4692_s1 + $0xa8] sm:$0xff]  ;;  %v253_v46 = vld [vmem:[%s4692_s1 + $0x1a0] sm:$0xff] }
  0x42   :  { %v235_v41 = vld [vmem:[%s4692_s1 + $0x110] sm:$0xff]  ;;  %v261_v32 = vld [vmem:[%s4692_s1 + $0x1e0] sm:$0xff] }
  0x45   :  { %2680 = vmatmul.mubr.msk.f32.vlgmr.msra.gmra.mrb[0].mxu0 %vm329_vm0, %v3551_v45 }
  0x46   :  { %2722 = vmatmul.mubr.msk.f32.vlgmr.msra.gmra.mrb[0].mxu1 %vm329_vm0, %v3551_v45  ;;  %3052 = vmatpush3.bf16.xpose.msk.msra.mxu0 %vm3436_vm1, %v3050_v55  ;;  %v165_v55 = vld [vmem:[%s4687_s0 + $0x2e0] sm:$0xff] }
  0x47   :  { %3100 = vmatpush3.bf16.xpose.msk.msra.mxu1 %vm3436_vm1, %v3098_v56  ;;  %2681 = vmatprep.mubr.msk.f32.mxu0 %vm329_vm0, %v3754_v57  ;;  %v166_v56 = vld [vmem:[%s4687_s0 + $0x2e8] sm:$0xff] }
  0x48   :  { %2723 = vmatprep.mubr.msk.f32.mxu1 %vm329_vm0, %v3754_v57  ;;  %3055 = vmatprep.subr.msk.bf16.mxu0 %vm3436_vm1, %v3053_v58  ;;  %v197_v58 = vld [vmem:[%s4687_s0 + $0x3e0] sm:$0xff]  ;;  %v3083_v63 = vpack.c.bf16 %v166_v56, %v165_v55  ;;  %v224_v55 = vld [vmem:[%s4692_s1 + $0xb8] sm:$0xff]  ;;  %v255_v56 = vld [vmem:[%s4692_s1 + $0x1b0] sm:$0xff] }
  0x49   :  { %3103 = vmatprep.subr.msk.bf16.mxu1 %vm3436_vm1, %v3101_v59  ;;  %2682 = vmatmul.mubr.msk.f32.gmra.mrb[2].mxu0 %vm329_vm0, %v3754_v57  ;;  %v198_v59 = vld [vmem:[%s4687_s0 + $0x3e8] sm:$0xff] }
  0x4a   :  { %2724 = vmatmul.mubr.msk.f32.gmra.mrb[2].mxu1 %vm329_vm0, %v3754_v57  ;;  %2683 = vmatprep.mubr.msk.f32.mxu0 %vm329_vm0, %v3767_v60  ;;  %v3131_v0 = vpack.c.bf16 %v198_v59, %v197_v58  ;;  %v256_v58 = vld [vmem:[%s4692_s1 + $0x1b8] sm:$0xff]  ;;  %v3158_v59 = vpack.c.bf16 %v206_v52, %v205_v51  ;;  %v247_v51 = vld [vmem:[%s4692_s1 + $0x170] sm:$0xff] }
  0x4b   :  { %2725 = vmatprep.mubr.msk.f32.mxu1 %vm329_vm0, %v3767_v60  ;;  %v248_v52 = vld [vmem:[%s4692_s1 + $0x178] sm:$0xff] }
  0x4d   :  { %2684 = vmatmul.mubr.msk.f32.gmra.mrb[4].mxu0 %vm329_vm0, %v3767_v60 }
  0x4e   :  { %2726 = vmatmul.mubr.msk.f32.gmra.mrb[4].mxu1 %vm329_vm0, %v3767_v60  ;;  %3058 = vmatpush3.bf16.xpose.msk.msra.mxu0 %vm3436_vm1, %v3056_v6  ;;  %v167_v6 = vld [vmem:[%s4687_s0 + $0x2f0] sm:$0xff] }
  0x4f   :  { %3106 = vmatpush3.bf16.xpose.msk.msra.mxu1 %vm3436_vm1, %v3104_v7  ;;  %2685 = vmatprep.mubr.msk.f32.mxu0 %vm329_vm0, %v3812_v8  ;;  %v168_v7 = vld [vmem:[%s4687_s0 + $0x2f8] sm:$0xff] }
  0x50   :  { %2727 = vmatprep.mubr.msk.f32.mxu1 %vm329_vm0, %v3812_v8  ;;  %3061 = vmatprep.subr.msk.bf16.mxu0 %vm3436_vm1, %v3059_v9  ;;  %v199_v9 = vld [vmem:[%s4687_s0 + $0x3f0] sm:$0xff]  ;;  %v3089_v14 = vpack.c.bf16 %v168_v7, %v167_v6  ;;  %v257_v6 = vld [vmem:[%s4692_s1 + $0x1c0] sm:$0xff]  ;;  %v258_v7 = vld [vmem:[%s4692_s1 + $0x1c8] sm:$0xff] }
  0x51   :  { %3109 = vmatprep.subr.msk.bf16.mxu1 %vm3436_vm1, %v3107_v10  ;;  %2686 = vmatmul.mubr.msk.f32.gmra.mrb[6].mxu0 %vm329_vm0, %v3812_v8  ;;  %v200_v10 = vld [vmem:[%s4687_s0 + $0x3f8] sm:$0xff] }
  0x52   :  { %2728 = vmatmul.mubr.msk.f32.gmra.mrb[6].mxu1 %vm329_vm0, %v3812_v8  ;;  %2687 = vmatprep.mubr.msk.f32.mxu0 %vm329_vm0, %v3825_v11  ;;  %v3137_v15 = vpack.c.bf16 %v200_v10, %v199_v9 }
  0x53   :  { %2729 = vmatprep.mubr.msk.f32.mxu1 %vm329_vm0, %v3825_v11 }
  0x55   :  { %2688 = vmatmul.mubr.msk.f32.gmra.mrb[8].mxu0 %vm329_vm0, %v3825_v11 }
  0x56   :  { %2730 = vmatmul.mubr.msk.f32.gmra.mrb[8].mxu1 %vm329_vm0, %v3825_v11  ;;  %3064 = vmatpush3.bf16.xpose.msk.msra.mxu0 %vm3436_vm1, %v3062_v20  ;;  %v217_v20 = vld [vmem:[%s4692_s1 + $0x80] sm:$0xff] }
  0x57   :  { %3112 = vmatpush3.bf16.xpose.msk.msra.mxu1 %vm3436_vm1, %v3110_v21  ;;  %3067 = vmatprep.subr.msk.bf16.mxu0 %vm3436_vm1, %v3065_v22  ;;  %v218_v21 = vld [vmem:[%s4692_s1 + $0x88] sm:$0xff]  ;;  %v249_v22 = vld [vmem:[%s4692_s1 + $0x180] sm:$0xff] }
  0x58   :  { %3115 = vmatprep.subr.msk.bf16.mxu1 %vm3436_vm1, %v3113_v23  ;;  %2763 = vmatprep.mubr.msk.f32.mxu0 %vm329_vm0, %v3551_v45  ;;  %v250_v23 = vld [vmem:[%s4692_s1 + $0x188] sm:$0xff]  ;;  %v3143_v26 = vpack.c.bf16 %v218_v21, %v217_v20  ;;  %v259_v20 = vld [vmem:[%s4692_s1 + $0x1d0] sm:$0xff]  ;;  %v260_v21 = vld [vmem:[%s4692_s1 + $0x1d8] sm:$0xff] }
  0x59   :  { %2805 = vmatprep.mubr.msk.f32.mxu1 %vm329_vm0, %v3551_v45  ;;  %v3191_v27 = vpack.c.bf16 %v250_v23, %v249_v22  ;;  %v3218_v23 = vpack.c.bf16 %v242_v17, %v241_v16  ;;  %v285_v16 = vld [vmem:[%s4692_s1 + $0x2a0] sm:$0xff]  ;;  %v286_v17 = vld [vmem:[%s4692_s1 + $0x2a8] sm:$0xff] }
  0x5e   :  { %3070 = vmatpush3.bf16.xpose.msk.msra.mxu0 %vm3436_vm1, %v3068_v34  ;;  %v251_v34 = vld [vmem:[%s4692_s1 + $0x190] sm:$0xff] }
  0x5f   :  { %3118 = vmatpush3.bf16.xpose.msk.msra.mxu1 %vm3436_vm1, %v3116_v35  ;;  %3073 = vmatprep.subr.msk.bf16.mxu0 %vm3436_vm1, %v3071_v36  ;;  %v252_v35 = vld [vmem:[%s4692_s1 + $0x198] sm:$0xff]  ;;  %v3146_v36 = vpack.c.bf16 %v202_v30, %v201_v29  ;;  %v243_v29 = vld [vmem:[%s4692_s1 + $0x150] sm:$0xff] }
  0x60   :  { %3121 = vmatprep.subr.msk.bf16.mxu1 %vm3436_vm1, %v3119_v37  ;;  %v3194_v37 = vpack.c.bf16 %v234_v2, %v233_v31  ;;  %v3197_v39 = vpack.c.bf16 %v252_v35, %v251_v34  ;;  %v244_v30 = vld [vmem:[%s4692_s1 + $0x158] sm:$0xff]  ;;  %v229_v31 = vld [vmem:[%s4692_s1 + $0xe0] sm:$0xff]  ;;  %v230_v2 = vld [vmem:[%s4692_s1 + $0xe8] sm:$0xff] }
  0x61   :  { %v3224_v35 = vpack.c.bf16 %v244_v30, %v243_v29  ;;  %v287_v29 = vld [vmem:[%s4692_s1 + $0x2b0] sm:$0xff]  ;;  %v288_v30 = vld [vmem:[%s4692_s1 + $0x2b8] sm:$0xff] }
  0x66   :  { %3076 = vmatpush3.bf16.xpose.msk.msra.mxu0 %vm3436_vm1, %v3074_v47  ;;  %v254_v47 = vld [vmem:[%s4692_s1 + $0x1a8] sm:$0xff] }
  0x67   :  { %3124 = vmatpush3.bf16.xpose.msk.msra.mxu1 %vm3436_vm1, %v3122_v48  ;;  %3079 = vmatprep.subr.msk.bf16.mxu0 %vm3436_vm1, %v3077_v49  ;;  %v3155_v49 = vpack.c.bf16 %v222_v44, %v221_v43  ;;  %v263_v43 = vld [vmem:[%s4692_s1 + $0x1f0] sm:$0xff]  ;;  %v264_v44 = vld [vmem:[%s4692_s1 + $0x1f8] sm:$0xff] }
  0x68   :  { %3127 = vmatprep.subr.msk.bf16.mxu1 %vm3436_vm1, %v3125_v50  ;;  %v3203_v50 = vpack.c.bf16 %v254_v47, %v253_v46 }
  0x6e   :  { %3082 = vmatpush3.bf16.xpose.msk.msra.mxu0 %vm3436_vm1, %v3080_v61 }
  0x6f   :  { %3130 = vmatpush3.bf16.xpose.msk.msra.mxu1 %vm3436_vm1, %v3128_v62  ;;  %3085 = vmatprep.subr.msk.bf16.mxu0 %vm3436_vm1, %v3083_v63  ;;  %v3161_v62 = vpack.c.bf16 %v224_v55, %v223_v54  ;;  %v3209_v63 = vpack.c.bf16 %v256_v58, %v255_v56  ;;  %v313_v54 = vld [vmem:[%s4692_s1 + $0x380] sm:$0xff]  ;;  %v314_v55 = vld [vmem:[%s4692_s1 + $0x388] sm:$0xff]  ;;  %v3236_v58 = vpack.c.bf16 %v248_v52, %v247_v51  ;;  %v291_v51 = vld [vmem:[%s4692_s1 + $0x2d0] sm:$0xff] }
  0x70   :  { %3133 = vmatprep.subr.msk.bf16.mxu1 %vm3436_vm1, %v3131_v0  ;;  %v207_v0 = vld [vmem:[%s4692_s1 + $0x30] sm:$0xff]  ;;  %v292_v52 = vld [vmem:[%s4692_s1 + $0x2d8] sm:$0xff] }
  0x71   :  { %v3164_v9 = vpack.c.bf16 %v208_v1, %v207_v0  ;;  %v297_v0 = vld [vmem:[%s4692_s1 + $0x300] sm:$0xff]  ;;  %v298_v1 = vld [vmem:[%s4692_s1 + $0x308] sm:$0xff] }
  0x76   :  { %3088 = vmatpush3.bf16.xpose.msk.msra.mxu0 %vm3436_vm1, %v3086_v12  ;;  %v3167_v12 = vpack.c.bf16 %v226_v5, %v225_v4  ;;  %v315_v4 = vld [vmem:[%s4692_s1 + $0x390] sm:$0xff]  ;;  %v316_v5 = vld [vmem:[%s4692_s1 + $0x398] sm:$0xff] }
  0x77   :  { %3136 = vmatpush3.bf16.xpose.msk.msra.mxu1 %vm3436_vm1, %v3134_v13  ;;  %3091 = vmatprep.subr.msk.bf16.mxu0 %vm3436_vm1, %v3089_v14  ;;  %v3215_v13 = vpack.c.bf16 %v258_v7, %v257_v6  ;;  %v209_v14 = vld [vmem:[%s4692_s1 + $0x40] sm:$0xff]  ;;  %v3290_v7 = vpack.c.bf16 %v298_v1, %v297_v0  ;;  %v294_v1 = vld [vmem:[%s4692_s1 + $0x2e8] sm:$0xff] }
  0x78   :  { %3139 = vmatprep.subr.msk.bf16.mxu1 %vm3436_vm1, %v3137_v15  ;;  %v210_v15 = vld [vmem:[%s4692_s1 + $0x48] sm:$0xff]  ;;  %v293_v0 = vld [vmem:[%s4692_s1 + $0x2e0] sm:$0xff] }
  0x79   :  { %v3170_v22 = vpack.c.bf16 %v210_v15, %v209_v14  ;;  %v299_v14 = vld [vmem:[%s4692_s1 + $0x310] sm:$0xff]  ;;  %v300_v15 = vld [vmem:[%s4692_s1 + $0x318] sm:$0xff] }
  0x7e   :  { %3094 = vmatpush3.bf16.xpose.msk.msra.mxu0 %vm3436_vm1, %v3092_v24  ;;  %v3173_v24 = vpack.c.bf16 %v228_v19, %v227_v18  ;;  %v317_v18 = vld [vmem:[%s4692_s1 + $0x3a0] sm:$0xff]  ;;  %v318_v19 = vld [vmem:[%s4692_s1 + $0x3a8] sm:$0xff] }
  0x7f   :  { %3142 = vmatpush3.bf16.xpose.msk.msra.mxu1 %vm3436_vm1, %v3140_v25  ;;  %3145 = vmatprep.subr.msk.bf16.mxu0 %vm4043_vm3, %v3143_v26  ;;  %v3221_v25 = vpack.c.bf16 %v260_v21, %v259_v20  ;;  %v211_v26 = vld [vmem:[%s4692_s1 + $0x50] sm:$0xff]  ;;  %v3296_v21 = vpack.c.bf16 %v300_v15, %v299_v14  ;;  %v296_v15 = vld [vmem:[%s4692_s1 + $0x2f8] sm:$0xff] }
  0x80   :  { %3193 = vmatprep.subr.msk.bf16.mxu1 %vm4043_vm3, %v3191_v27  ;;  %v212_v27 = vld [vmem:[%s4692_s1 + $0x58] sm:$0xff]  ;;  %v295_v14 = vld [vmem:[%s4692_s1 + $0x2f0] sm:$0xff] }
  0x81   :  { %v3176_v34 = vpack.c.bf16 %v212_v27, %v211_v26  ;;  %v301_v26 = vld [vmem:[%s4692_s1 + $0x320] sm:$0xff]  ;;  %v302_v27 = vld [vmem:[%s4692_s1 + $0x328] sm:$0xff] }
  0x85   :  { %2764 = vmatmul.mubr.msk.f32.vlgmr.msra.gmra.mrb[10].mxu0 %vm329_vm0, %v3551_v45 }
  0x86   :  { %2806 = vmatmul.mubr.msk.f32.vlgmr.msra.gmra.mrb[10].mxu1 %vm329_vm0, %v3551_v45  ;;  %3148 = vmatpush3.bf16.xpose.msk.msra.mxu0 %vm4043_vm3, %v3146_v36  ;;  %v204_v45 = vld [vmem:[%s4692_s1 + $0x18] sm:$0xff]  ;;  %v3179_v36 = vpack.c.bf16 %v230_v2, %v229_v31  ;;  %v319_v31 = vld [vmem:[%s4692_s1 + $0x3b0] sm:$0xff] }
  0x87   :  { %3196 = vmatpush3.bf16.xpose.msk.msra.mxu1 %vm4043_vm3, %v3194_v37  ;;  %2765 = vmatprep.mubr.msk.f32.mxu0 %vm329_vm0, %v3754_v57  ;;  %v3152_v48 = vpack.c.bf16 %v204_v45, %v203_v40  ;;  %v3227_v37 = vpack.c.bf16 %v262_v33, %v261_v32  ;;  %v245_v40 = vld [vmem:[%s4692_s1 + $0x160] sm:$0xff]  ;;  %v246_v45 = vld [vmem:[%s4692_s1 + $0x168] sm:$0xff]  ;;  %v320_v2 = vld [vmem:[%s4692_s1 + $0x3b8] sm:$0xff]  ;;  %v3302_v33 = vpack.c.bf16 %v302_v27, %v301_v26 }
  0x88   :  { %2807 = vmatprep.mubr.msk.f32.mxu1 %vm329_vm0, %v3754_v57  ;;  %3151 = vmatprep.subr.msk.bf16.mxu0 %vm4043_vm3, %v3149_v38  ;;  %v213_v38 = vld [vmem:[%s4692_s1 + $0x60] sm:$0xff]  ;;  %v3230_v47 = vpack.c.bf16 %v246_v45, %v245_v40  ;;  %v290_v45 = vld [vmem:[%s4692_s1 + $0x2c8] sm:$0xff] }
  0x89   :  { %3199 = vmatprep.subr.msk.bf16.mxu1 %vm4043_vm3, %v3197_v39  ;;  %2766 = vmatmul.mubr.msk.f32.gmra.mrb[12].mxu0 %vm329_vm0, %v3754_v57  ;;  %v214_v39 = vld [vmem:[%s4692_s1 + $0x68] sm:$0xff]  ;;  %v289_v40 = vld [vmem:[%s4692_s1 + $0x2c0] sm:$0xff] }
  0x8a   :  { %2808 = vmatmul.mubr.msk.f32.gmra.mrb[12].mxu1 %vm329_vm0, %v3754_v57  ;;  %2767 = vmatprep.mubr.msk.f32.mxu0 %vm329_vm0, %v3767_v60  ;;  %v3200_v57 = vpack.c.bf16 %v236_v42, %v235_v41  ;;  %v231_v41 = vld [vmem:[%s4692_s1 + $0xf0] sm:$0xff]  ;;  %v232_v42 = vld [vmem:[%s4692_s1 + $0xf8] sm:$0xff]  ;;  %v3182_v46 = vpack.c.bf16 %v214_v39, %v213_v38 }
  0x8b   :  { %2809 = vmatprep.mubr.msk.f32.mxu1 %vm329_vm0, %v3767_v60  ;;  %v303_v38 = vld [vmem:[%s4692_s1 + $0x330] sm:$0xff]  ;;  %v304_v39 = vld [vmem:[%s4692_s1 + $0x338] sm:$0xff] }
  0x8d   :  { %2768 = vmatmul.mubr.msk.f32.gmra.mrb[14].mxu0 %vm329_vm0, %v3767_v60 }
  0x8e   :  { %2810 = vmatmul.mubr.msk.f32.gmra.mrb[14].mxu1 %vm329_vm0, %v3767_v60  ;;  %3154 = vmatpush3.bf16.xpose.msk.msra.mxu0 %vm4043_vm3, %v3152_v48  ;;  %v237_v60 = vld [vmem:[%s4692_s1 + $0x120] sm:$0xff]  ;;  %v3185_v48 = vpack.c.bf16 %v232_v42, %v231_v41  ;;  %v322_v42 = vld [vmem:[%s4692_s1 + $0x3c8] sm:$0xff] }
  0x8f   :  { %3202 = vmatpush3.bf16.xpose.msk.msra.mxu1 %vm4043_vm3, %v3200_v57  ;;  %2769 = vmatprep.mubr.msk.f32.mxu0 %vm329_vm0, %v3812_v8  ;;  %v3206_v61 = vpack.c.bf16 %v238_v53, %v237_v60  ;;  %v3233_v57 = vpack.c.bf16 %v264_v44, %v263_v43  ;;  %v281_v60 = vld [vmem:[%s4692_s1 + $0x280] sm:$0xff]  ;;  %v282_v53 = vld [vmem:[%s4692_s1 + $0x288] sm:$0xff]  ;;  %v3308_v44 = vpack.c.bf16 %v304_v39, %v303_v38 }
  0x90   :  { %2811 = vmatprep.mubr.msk.f32.mxu1 %vm329_vm0, %v3812_v8  ;;  %3157 = vmatprep.subr.msk.bf16.mxu0 %vm4043_vm3, %v3155_v49  ;;  %v215_v49 = vld [vmem:[%s4692_s1 + $0x70] sm:$0xff]  ;;  %v321_v41 = vld [vmem:[%s4692_s1 + $0x3c0] sm:$0xff] }
  0x91   :  { %3205 = vmatprep.subr.msk.bf16.mxu1 %vm4043_vm3, %v3203_v50  ;;  %2770 = vmatmul.mubr.msk.f32.gmra.mrb[16].mxu0 %vm329_vm0, %v3812_v8  ;;  %v216_v50 = vld [vmem:[%s4692_s1 + $0x78] sm:$0xff] }
  0x92   :  { %2812 = vmatmul.mubr.msk.f32.gmra.mrb[16].mxu1 %vm329_vm0, %v3812_v8  ;;  %2771 = vmatprep.mubr.msk.f32.mxu0 %vm329_vm0, %v3825_v11  ;;  %v4182_v8 = vld [vmem:[%s4693_s3] sm:$0x7]  ;;  %v3188_v56 = vpack.c.bf16 %v216_v50, %v215_v49  ;;  %v306_v50 = vld [vmem:[%s4692_s1 + $0x348] sm:$0xff] }
  0x93   :  { %2813 = vmatprep.mubr.msk.f32.mxu1 %vm329_vm0, %v3825_v11  ;;  %v305_v49 = vld [vmem:[%s4692_s1 + $0x340] sm:$0xff] }
  0x95   :  { %2772 = vmatmul.mubr.msk.f32.gmra.mrb[18].mxu0 %vm329_vm0, %v3825_v11 }
  0x96   :  { %2814 = vmatmul.mubr.msk.f32.gmra.mrb[18].mxu1 %vm329_vm0, %v3825_v11  ;;  %3160 = vmatpush3.bf16.xpose.msk.msra.mxu0 %vm4043_vm3, %v3158_v59  ;;  %v239_v11 = vld [vmem:[%s4692_s1 + $0x130] sm:$0xff]  ;;  %v3239_v59 = vpack.c.bf16 %v282_v53, %v281_v60  ;;  %v324_v53 = vld [vmem:[%s4692_s1 + $0x3d8] sm:$0xff] }
  0x97   :  { %3208 = vmatpush3.bf16.xpose.msk.msra.mxu1 %vm4043_vm3, %v3206_v61  ;;  %3163 = vmatprep.subr.msk.bf16.mxu0 %vm4043_vm3, %v3161_v62  ;;  %v3212_v10 = vpack.c.bf16 %v240_v3, %v239_v11  ;;  %v3287_v61 = vpack.c.bf16 %v314_v55, %v313_v54  ;;  %v265_v62 = vld [vmem:[%s4692_s1 + $0x200] sm:$0xff]  ;;  %v283_v11 = vld [vmem:[%s4692_s1 + $0x290] sm:$0xff]  ;;  %v284_v3 = vld [vmem:[%s4692_s1 + $0x298] sm:$0xff]  ;;  %v3314_v55 = vpack.c.bf16 %v306_v50, %v305_v49 }
  0x98   :  { %3211 = vmatprep.subr.msk.bf16.mxu1 %vm4043_vm3, %v3209_v63  ;;  %2847 = vmatprep.mubr.msk.f32.mxu0 %vm1109_vm2, %v4182_v8  ;;  %v266_v63 = vld [vmem:[%s4692_s1 + $0x208] sm:$0xff]  ;;  %v323_v60 = vld [vmem:[%s4692_s1 + $0x3d0] sm:$0xff]  ;;  %v4622_v39 = vpop.permute.xlu1 %58 }
  0x99   :  { %2881 = vmatprep.mubr.msk.f32.mxu1 %vm1109_vm2, %v4182_v8  ;;  %v3242_v6 = vpack.c.bf16 %v266_v63, %v265_v62  ;;  %v307_v62 = vld [vmem:[%s4692_s1 + $0x350] sm:$0xff]  ;;  %v308_v63 = vld [vmem:[%s4692_s1 + $0x358] sm:$0xff] }
  0x9e   :  { %3166 = vmatpush3.bf16.xpose.msk.msra.mxu0 %vm4043_vm3, %v3164_v9  ;;  %v3245_v9 = vpack.c.bf16 %v284_v3, %v283_v11  ;;  %v325_v11 = vld [vmem:[%s4692_s1 + $0x3e0] sm:$0xff]  ;;  %v326_v3 = vld [vmem:[%s4692_s1 + $0x3e8] sm:$0xff] }
  0x9f   :  { %3214 = vmatpush3.bf16.xpose.msk.msra.mxu1 %vm4043_vm3, %v3212_v10  ;;  %3169 = vmatprep.subr.msk.bf16.mxu0 %vm4043_vm3, %v3167_v12  ;;  %v3293_v10 = vpack.c.bf16 %v316_v5, %v315_v4  ;;  %v267_v12 = vld [vmem:[%s4692_s1 + $0x210] sm:$0xff]  ;;  %v3320_v5 = vpack.c.bf16 %v308_v63, %v307_v62 }
  0xa0   :  { %3217 = vmatprep.subr.msk.bf16.mxu1 %vm4043_vm3, %v3215_v13  ;;  %v268_v13 = vld [vmem:[%s4692_s1 + $0x218] sm:$0xff] }
  0xa1   :  { %v3248_v20 = vpack.c.bf16 %v268_v13, %v267_v12  ;;  %v309_v12 = vld [vmem:[%s4692_s1 + $0x360] sm:$0xff]  ;;  %v310_v13 = vld [vmem:[%s4692_s1 + $0x368] sm:$0xff] }
  0xa6   :  { %3172 = vmatpush3.bf16.xpose.msk.msra.mxu0 %vm4043_vm3, %v3170_v22  ;;  %v3251_v22 = vpack.c.bf16 %v286_v17, %v285_v16  ;;  %v327_v16 = vld [vmem:[%s4692_s1 + $0x3f0] sm:$0xff]  ;;  %v328_v17 = vld [vmem:[%s4692_s1 + $0x3f8] sm:$0xff] }
  0xa7   :  { %3220 = vmatpush3.bf16.xpose.msk.msra.mxu1 %vm4043_vm3, %v3218_v23  ;;  %3175 = vmatprep.subr.msk.bf16.mxu0 %vm4043_vm3, %v3173_v24  ;;  %v3299_v23 = vpack.c.bf16 %v318_v19, %v317_v18  ;;  %v269_v24 = vld [vmem:[%s4692_s1 + $0x220] sm:$0xff]  ;;  %v3326_v19 = vpack.c.bf16 %v310_v13, %v309_v12 }
  0xa8   :  { %3223 = vmatprep.subr.msk.bf16.mxu1 %vm4043_vm3, %v3221_v25  ;;  %v270_v25 = vld [vmem:[%s4692_s1 + $0x228] sm:$0xff] }
  0xa9   :  { %v3254_v32 = vpack.c.bf16 %v270_v25, %v269_v24  ;;  %v311_v24 = vld [vmem:[%s4692_s1 + $0x370] sm:$0xff]  ;;  %v312_v25 = vld [vmem:[%s4692_s1 + $0x378] sm:$0xff] }
  0xaa   :  { %v3332_v27 = vpack.c.bf16 %v312_v25, %v311_v24 }
  0xae   :  { %3178 = vmatpush3.bf16.xpose.msk.msra.mxu0 %vm4043_vm3, %v3176_v34  ;;  %v3257_v34 = vpack.c.bf16 %v288_v30, %v287_v29  ;;  %v3381_v29 = vmov 0.0  }
  0xaf   :  { %3226 = vmatpush3.bf16.xpose.msk.msra.mxu1 %vm4043_vm3, %v3224_v35  ;;  %3181 = vmatprep.subr.msk.bf16.mxu0 %vm4043_vm3, %v3179_v36  ;;  %v3305_v35 = vpack.c.bf16 %v320_v2, %v319_v31  ;;  %v271_v36 = vld [vmem:[%s4692_s1 + $0x230] sm:$0xff]  ;;  %v4612_v31 = vpop.permute.xlu0 %48 }
  0xb0   :  { %3229 = vmatprep.subr.msk.bf16.mxu1 %vm4043_vm3, %v3227_v37  ;;  %v272_v37 = vld [vmem:[%s4692_s1 + $0x238] sm:$0xff] }
  0xb1   :  { %v3260_v43 = vpack.c.bf16 %v272_v37, %v271_v36 }
  0xb3   :  { %v4620_v38 = vpop.permute.xlu0 %53 }
  0xb6   :  { %3184 = vmatpush3.bf16.xpose.msk.msra.mxu0 %vm4043_vm3, %v3182_v46  ;;  %v3263_v46 = vpack.c.bf16 %v290_v45, %v289_v40 }
  0xb7   :  { %3232 = vmatpush3.bf16.xpose.msk.msra.mxu1 %vm4043_vm3, %v3230_v47  ;;  %3187 = vmatprep.subr.msk.bf16.mxu0 %vm4043_vm3, %v3185_v48  ;;  %v3311_v47 = vpack.c.bf16 %v322_v42, %v321_v41  ;;  %v273_v48 = vld [vmem:[%s4692_s1 + $0x240] sm:$0xff] }
  0xb8   :  { %3235 = vmatprep.subr.msk.bf16.mxu1 %vm4043_vm3, %v3233_v57  ;;  %v274_v57 = vld [vmem:[%s4692_s1 + $0x248] sm:$0xff] }
  0xb9   :  { %v3266_v54 = vpack.c.bf16 %v274_v57, %v273_v48 }
  0xbe   :  { %3190 = vmatpush3.bf16.xpose.msk.msra.mxu0 %vm4043_vm3, %v3188_v56  ;;  %v3269_v56 = vpack.c.bf16 %v292_v52, %v291_v51 }
  0xbf   :  { %3238 = vmatpush3.bf16.xpose.msk.msra.mxu1 %vm4043_vm3, %v3236_v58  ;;  %3241 = vmatprep.subr.msk.bf16.mxu0 %vm4043_vm3, %v3239_v59  ;;  %v3317_v58 = vpack.c.bf16 %v324_v53, %v323_v60  ;;  %v275_v59 = vld [vmem:[%s4692_s1 + $0x250] sm:$0xff] }
  0xc0   :  { %3289 = vmatprep.subr.msk.bf16.mxu1 %vm4043_vm3, %v3287_v61  ;;  %v276_v61 = vld [vmem:[%s4692_s1 + $0x258] sm:$0xff] }
  0xc1   :  { %v3272_v4 = vpack.c.bf16 %v276_v61, %v275_v59 }
  0xc5   :  { %2848 = vmatmul.mubr.msk.f32.vlgmr.msra.gmra.mrb[20].mxu0 %vm1109_vm2, %v4182_v8 }
  0xc6   :  { %2882 = vmatmul.mubr.msk.f32.vlgmr.msra.gmra.mrb[0].mxu1 %vm1109_vm2, %v4182_v8  ;;  %3244 = vmatpush3.bf16.xpose.msk.msra.mxu0 %vm4043_vm3, %v3242_v6  ;;  %v3275_v6 = vpack.c.bf16 %v294_v1, %v293_v0 }
  0xc7   :  { %3292 = vmatpush3.bf16.xpose.msk.msra.mxu1 %vm4043_vm3, %v3290_v7  ;;  %3247 = vmatprep.subr.msk.bf16.mxu0 %vm4043_vm3, %v3245_v9  ;;  %v3323_v7 = vpack.c.bf16 %v326_v3, %v325_v11  ;;  %v277_v9 = vld [vmem:[%s4692_s1 + $0x260] sm:$0xff] }
  0xc8   :  { %3295 = vmatprep.subr.msk.bf16.mxu1 %vm4043_vm3, %v3293_v10  ;;  %2915 = vmatprep.mubr.msk.f32.mxu0 %vm1109_vm2, %v4182_v8  ;;  %v278_v10 = vld [vmem:[%s4692_s1 + $0x268] sm:$0xff] }
  0xc9   :  { %2949 = vmatprep.mubr.msk.f32.mxu1 %vm1109_vm2, %v4182_v8  ;;  %v3278_v18 = vpack.c.bf16 %v278_v10, %v277_v9 }
  0xce   :  { %3250 = vmatpush3.bf16.xpose.msk.msra.mxu0 %vm4043_vm3, %v3248_v20  ;;  %v3281_v20 = vpack.c.bf16 %v296_v15, %v295_v14 }
  0xcf   :  { %3298 = vmatpush3.bf16.xpose.msk.msra.mxu1 %vm4043_vm3, %v3296_v21  ;;  %3253 = vmatprep.subr.msk.bf16.mxu0 %vm4043_vm3, %v3251_v22  ;;  %v3329_v21 = vpack.c.bf16 %v328_v17, %v327_v16  ;;  %v279_v22 = vld [vmem:[%s4692_s1 + $0x270] sm:$0xff] }
  0xd0   :  { %3301 = vmatprep.subr.msk.bf16.mxu1 %vm4043_vm3, %v3299_v23  ;;  %v280_v23 = vld [vmem:[%s4692_s1 + $0x278] sm:$0xff] }
  0xd1   :  { %v3284_v26 = vpack.c.bf16 %v280_v23, %v279_v22 }
  0xd6   :  { %3256 = vmatpush3.bf16.xpose.msk.msra.mxu0 %vm4043_vm3, %v3254_v32 }
  0xd7   :  { %3304 = vmatpush3.bf16.xpose.msk.msra.mxu1 %vm4043_vm3, %v3302_v33  ;;  %3259 = vmatprep.subr.msk.bf16.mxu0 %vm4043_vm3, %v3257_v34 }
  0xd8   :  { %3307 = vmatprep.subr.msk.bf16.mxu1 %vm4043_vm3, %v3305_v35 }
  0xde   :  { %3262 = vmatpush3.bf16.xpose.msk.msra.mxu0 %vm4043_vm3, %v3260_v43 }
  0xdf   :  { %3310 = vmatpush3.bf16.xpose.msk.msra.mxu1 %vm4043_vm3, %v3308_v44  ;;  %3265 = vmatprep.subr.msk.bf16.mxu0 %vm4043_vm3, %v3263_v46 }
  0xe0   :  { %3313 = vmatprep.subr.msk.bf16.mxu1 %vm4043_vm3, %v3311_v47 }
  0xe6   :  { %3268 = vmatpush3.bf16.xpose.msk.msra.mxu0 %vm4043_vm3, %v3266_v54 }
  0xe7   :  { %3316 = vmatpush3.bf16.xpose.msk.msra.mxu1 %vm4043_vm3, %v3314_v55  ;;  %3271 = vmatprep.subr.msk.bf16.mxu0 %vm4043_vm3, %v3269_v56 }
  0xe8   :  { %3319 = vmatprep.subr.msk.bf16.mxu1 %vm4043_vm3, %v3317_v58 }
  0xee   :  { %3274 = vmatpush3.bf16.xpose.msk.msra.mxu0 %vm4043_vm3, %v3272_v4  ;;  %v4632_v4 = vpop.permute.xlu1 %63 }
  0xef   :  { %3322 = vmatpush3.bf16.xpose.msk.msra.mxu1 %vm4043_vm3, %v3320_v5  ;;  %3277 = vmatprep.subr.msk.bf16.mxu0 %vm4043_vm3, %v3275_v6 }
  0xf0   :  { %3325 = vmatprep.subr.msk.bf16.mxu1 %vm4043_vm3, %v3323_v7 }
  0xf6   :  { %3280 = vmatpush3.bf16.xpose.msk.msra.mxu0 %vm4043_vm3, %v3278_v18 }
  0xf7   :  { %3328 = vmatpush3.bf16.xpose.msk.msra.mxu1 %vm4043_vm3, %v3326_v19  ;;  %3283 = vmatprep.subr.msk.bf16.mxu0 %vm4043_vm3, %v3281_v20 }
  0xf8   :  { %3331 = vmatprep.subr.msk.bf16.mxu1 %vm4043_vm3, %v3329_v21 }
  0xfe   :  { %3286 = vmatpush3.bf16.xpose.msk.msra.mxu0 %vm4043_vm3, %v3284_v26 }
  0xff   :  { %3334 = vmatpush3.bf16.xpose.msk.msra.mxu1 %vm4043_vm3, %v3332_v27  ;;  %v4641_v27 = vld [vmem:[%s4694_s6] sm:$0x7] }
 0x105   :  { %2916 = vmatmul.mubr.msk.f32.vlgmr.msra.gmra.mrb[10].mxu0 %vm1109_vm2, %v4182_v8 }
 0x106   :  { %2950 = vmatmul.mubr.msk.f32.vlgmr.msra.gmra.mrb[10].mxu1 %vm1109_vm2, %v4182_v8  ;;  %2028 = vmatprep.mubr.f32.mxu0 %v3381_v29 }
 0x107   :  { %2099 = vmatprep.mubr.f32.mxu1 %v3381_v29 }
 0x118   :  { %v4610_v30 = vpop.f32.mrb[0].mxu0 }
 0x119   :  { %v4614_v2 = vpop.f32.mrb[1].mxu0 }
 0x11c   :  { %v801_v32 = vpop.f32.mrb[2].mxu0 }
 0x11d   :  { %v896_v28 = vpop.f32.mrb[2].mxu1  ;;  %v1896_v33 = vadd.f32 %v801_v32, %v4612_v31  ;;  %v803_v35 = vpop.f32.mrb[3].mxu0 }
 0x11e   :  { %v1898_v34 = vadd.f32 %v896_v28, %v4612_v31  ;;  %v898_v36 = vpop.f32.mrb[3].mxu1  ;;  %v1897_v8 = vadd.f32 %v803_v35, %v4612_v31 }
 0x11f   :  { %v1899_v37 = vadd.f32 %v898_v36, %v4612_v31  ;;  %v1928_v41 = vmax.f32 %v1896_v33, 0.0 }
 0x120   :  { %v807_v40 = vpop.f32.mrb[4].mxu0  ;;  %v1930_v42 = vmax.f32 %v1898_v34, 0.0  ;;  %v1929_v48 = vmax.f32 %v1897_v8, 0.0 }
 0x121   :  { %v902_v45 = vpop.f32.mrb[4].mxu1  ;;  %v809_v43 = vpop.f32.mrb[5].mxu0  ;;  %v1904_v46 = vadd.f32 %v807_v40, %v4620_v38  ;;  %v1931_v57 = vmax.f32 %v1899_v37, 0.0 }
 0x122   :  { %v904_v44 = vpop.f32.mrb[5].mxu1  ;;  %v1906_v47 = vadd.f32 %v902_v45, %v4620_v38  ;;  %v1905_v49 = vadd.f32 %v809_v43, %v4620_v38 }
 0x123   :  { %v1907_v50 = vadd.f32 %v904_v44, %v4620_v38  ;;  %v1936_v51 = vmax.f32 %v1904_v46, 0.0 }
 0x124   :  { %v1938_v52 = vmax.f32 %v1906_v47, 0.0  ;;  %v1937_v60 = vmax.f32 %v1905_v49, 0.0  ;;  %v813_v54 = vpop.f32.mrb[6].mxu0 }
 0x125   :  { %v1939_v53 = vmax.f32 %v1907_v50, 0.0  ;;  %v908_v55 = vpop.f32.mrb[6].mxu1  ;;  %v1912_v56 = vadd.f32 %v813_v54, %v4622_v39  ;;  %v815_v59 = vpop.f32.mrb[7].mxu0  ;;  %v3337_v62 = vpack.c.bf16 %v1936_v51, %v1928_v41 }
 0x126   :  { %v1914_v58 = vadd.f32 %v908_v55, %v4622_v39  ;;  %v910_v61 = vpop.f32.mrb[7].mxu1  ;;  %v3345_v63 = vpack.c.bf16 %v1938_v52, %v1930_v42  ;;  %v3335_v0 = vpack.c.bf16 %v1937_v60, %v1929_v48  ;;  %v1913_v11 = vadd.f32 %v815_v59, %v4622_v39 }
 0x127   :  { %v3343_v1 = vpack.c.bf16 %v1939_v53, %v1931_v57  ;;  %v1915_v3 = vadd.f32 %v910_v61, %v4622_v39  ;;  %v1944_v7 = vmax.f32 %v1912_v56, 0.0 }
 0x128   :  { %v819_v5 = vpop.f32.mrb[8].mxu0  ;;  %3336 = vmatprep.subr.bf16.mxu0 %v3335_v0  ;;  %v1946_v9 = vmax.f32 %v1914_v58, 0.0  ;;  %v1945_v15 = vmax.f32 %v1913_v11, 0.0 }
 0x129   :  { %v914_v6 = vpop.f32.mrb[8].mxu1  ;;  %3344 = vmatprep.subr.bf16.mxu1 %v3343_v1  ;;  %v821_v10 = vpop.f32.mrb[9].mxu0  ;;  %3338 = vmatpush1.bf16.msra.mxu0 %v3337_v62  ;;  %v1920_v13 = vadd.f32 %v819_v5, %v4632_v4  ;;  %v1947_v16 = vmax.f32 %v1915_v3, 0.0 }
 0x12a   :  { %v916_v12 = vpop.f32.mrb[9].mxu1  ;;  %3346 = vmatpush1.bf16.msra.mxu1 %v3345_v63  ;;  %v1922_v14 = vadd.f32 %v914_v6, %v4632_v4  ;;  %v1921_v17 = vadd.f32 %v821_v10, %v4632_v4 }
 0x12b   :  { %v1923_v18 = vadd.f32 %v916_v12, %v4632_v4  ;;  %v1952_v19 = vmax.f32 %v1920_v13, 0.0 }
 0x12c   :  { %v1954_v20 = vmax.f32 %v1922_v14, 0.0  ;;  %v1953_v21 = vmax.f32 %v1921_v17, 0.0 }
 0x12d   :  { %v1955_v22 = vmax.f32 %v1923_v18, 0.0  ;;  %v3341_v23 = vpack.c.bf16 %v1952_v19, %v1944_v7 }
 0x12e   :  { %v3349_v24 = vpack.c.bf16 %v1954_v20, %v1946_v9  ;;  %v3339_v25 = vpack.c.bf16 %v1953_v21, %v1945_v15 }
 0x12f   :  { %v3347_v26 = vpack.c.bf16 %v1955_v22, %v1947_v16 }
 0x130   :  { %3340 = vmatprep.subr.bf16.mxu0 %v3339_v25 }
 0x131   :  { %3348 = vmatprep.subr.bf16.mxu1 %v3347_v26  ;;  %3342 = vmatpush1.bf16.msra.mxu0 %v3341_v23 }
 0x132   :  { %3350 = vmatpush1.bf16.msra.mxu1 %v3349_v24 }
 0x134   :  { %2643 = vmatmul.mubr.msk.f32.vlgmr.msra.gmra.mrb[22].mxu0 %vm1960_vm4, %v4641_v27 }
 0x135   :  { %2644 = vmatmul.mubr.msk.f32.vlgmr.msra.gmra.mrb[20].mxu1 %vm1960_vm4, %v4641_v27  ;;  %2170 = vmatprep.mubr.f32.mxu0 %v3381_v29 }
 0x136   :  { %2241 = vmatprep.mubr.f32.mxu1 %v3381_v29 }
 0x15c   :  { %v991_v32 = vpop.f32.mrb[12].mxu0 }
 0x15d   :  { %v1086_v28 = vpop.f32.mrb[12].mxu1  ;;  %v993_v33 = vpop.f32.mrb[13].mxu0  ;;  %v1900_v35 = vadd.f32 %v991_v32, %v4612_v31 }
 0x15e   :  { %v1088_v34 = vpop.f32.mrb[13].mxu1  ;;  %v1902_v36 = vadd.f32 %v1086_v28, %v4612_v31  ;;  %v1901_v8 = vadd.f32 %v993_v33, %v4612_v31  ;;  %v40_v32 = vpop.permute.xlu1 %39 }
 0x15f   :  { %v1903_v37 = vadd.f32 %v1088_v34, %v4612_v31  ;;  %v1932_v48 = vmax.f32 %v1900_v35, 0.0 }
 0x160   :  { %v997_v40 = vpop.f32.mrb[14].mxu0  ;;  %v1934_v57 = vmax.f32 %v1902_v36, 0.0  ;;  %v1933_v51 = vmax.f32 %v1901_v8, 0.0 }
 0x161   :  { %v1092_v45 = vpop.f32.mrb[14].mxu1  ;;  %v1908_v41 = vadd.f32 %v997_v40, %v4620_v38  ;;  %v999_v43 = vpop.f32.mrb[15].mxu0  ;;  %v1935_v52 = vmax.f32 %v1903_v37, 0.0 }
 0x162   :  { %v1910_v42 = vadd.f32 %v1092_v45, %v4620_v38  ;;  %v1094_v44 = vpop.f32.mrb[15].mxu1  ;;  %v1909_v46 = vadd.f32 %v999_v43, %v4620_v38 }
 0x163   :  { %v1911_v47 = vadd.f32 %v1094_v44, %v4620_v38  ;;  %v1940_v49 = vmax.f32 %v1908_v41, 0.0 }
 0x164   :  { %v1942_v50 = vmax.f32 %v1910_v42, 0.0  ;;  %v1941_v60 = vmax.f32 %v1909_v46, 0.0  ;;  %v1003_v53 = vpop.f32.mrb[16].mxu0 }
 0x165   :  { %v1943_v31 = vmax.f32 %v1911_v47, 0.0  ;;  %v1098_v54 = vpop.f32.mrb[16].mxu1  ;;  %v3353_v55 = vpack.c.bf16 %v1940_v49, %v1932_v48  ;;  %v1005_v58 = vpop.f32.mrb[17].mxu0  ;;  %v1916_v63 = vadd.f32 %v1003_v53, %v4622_v39 }
 0x166   :  { %v3361_v56 = vpack.c.bf16 %v1942_v50, %v1934_v57  ;;  %v1100_v59 = vpop.f32.mrb[17].mxu1  ;;  %v3351_v61 = vpack.c.bf16 %v1941_v60, %v1933_v51  ;;  %v1918_v38 = vadd.f32 %v1098_v54, %v4622_v39  ;;  %v1917_v0 = vadd.f32 %v1005_v58, %v4622_v39 }
 0x167   :  { %v3359_v62 = vpack.c.bf16 %v1943_v31, %v1935_v52  ;;  %v1919_v1 = vadd.f32 %v1100_v59, %v4622_v39  ;;  %v1948_v13 = vmax.f32 %v1916_v63, 0.0  ;;  %v3382_v59 = vmov 1966171168   ;;  %v70_v63 = vpop.permute.xlu0 %69 }
 0x168   :  { %v1009_v11 = vpop.f32.mrb[18].mxu0  ;;  %3352 = vmatprep.subr.bf16.mxu0 %v3351_v61  ;;  %v1950_v14 = vmax.f32 %v1918_v38, 0.0  ;;  %v1949_v16 = vmax.f32 %v1917_v0, 0.0  ;;  %v2261_v61 = vunpack.c.l.s4 %v3382_v59 }
 0x169   :  { %v1104_v3 = vpop.f32.mrb[18].mxu1  ;;  %3360 = vmatprep.subr.bf16.mxu1 %v3359_v62  ;;  %v1924_v5 = vadd.f32 %v1009_v11, %v4632_v4  ;;  %v1011_v7 = vpop.f32.mrb[19].mxu0  ;;  %3354 = vmatpush1.bf16.msra.mxu0 %v3353_v55  ;;  %v1951_v17 = vmax.f32 %v1919_v1, 0.0 }
 0x16a   :  { %v1926_v6 = vadd.f32 %v1104_v3, %v4632_v4  ;;  %v1106_v9 = vpop.f32.mrb[19].mxu1  ;;  %3362 = vmatpush1.bf16.msra.mxu1 %v3361_v56  ;;  %v1925_v10 = vadd.f32 %v1011_v7, %v4632_v4  ;;  %v2262_v62 = vunpack.c.0.s8 %v2261_v61 }
 0x16b   :  { %v1927_v12 = vadd.f32 %v1106_v9, %v4632_v4  ;;  %v1956_v15 = vmax.f32 %v1924_v5, 0.0  ;;  %v1797_v4 = vlaneseq }
 0x16c   :  { %v1958_v39 = vmax.f32 %v1926_v6, 0.0  ;;  %v1957_v18 = vmax.f32 %v1925_v10, 0.0 }
 0x16d   :  { %v1959_v19 = vmax.f32 %v1927_v12, 0.0  ;;  %v3357_v20 = vpack.c.bf16 %v1956_v15, %v1948_v13  ;;  %v1857_v24 = vshrl.u32 %v1797_v4, 7  ;;  %v1798_v25 = vand.u32 127, %v1797_v4 }
 0x16e   :  { %v3365_v21 = vpack.c.bf16 %v1958_v39, %v1950_v14  ;;  %v3355_v22 = vpack.c.bf16 %v1957_v18, %v1949_v16 }
 0x16f   :  { %v3363_v23 = vpack.c.bf16 %v1959_v19, %v1951_v17  ;;  %v1858_v26 = vsub.s32 2, %v1857_v24  ;;  %vm1816_vm5 = vcmp.lt.s32.totalorder %v1798_v25, 8  ;;  %v2265_v38 = vsub.s32 %v2262_v62, %v1857_v24 }
 0x170   :  { %3356 = vmatprep.subr.bf16.mxu0 %v3355_v22 }
 0x171   :  { %3364 = vmatprep.subr.bf16.mxu1 %v3363_v23  ;;  %3358 = vmatpush1.bf16.msra.mxu0 %v3357_v20  ;;  %v1863_v28 = vrot.slane %v3381_v29, %v1858_v26 }
 0x172   :  { %3366 = vmatpush1.bf16.msra.mxu1 %v3365_v21 }
 0x174   :  { %2645 = vmatmul.mubr.msk.f32.vlgmr.msra.gmra.mrb[24].mxu0 %vm1960_vm4, %v4641_v27 }
 0x175   :  { %2646 = vmatmul.mubr.msk.f32.vlgmr.msra.gmra.mrb[22].mxu1 %vm1960_vm4, %v4641_v27 }
 0x198   :  { %v1563_v33 = vpop.f32.mrb[20].mxu0 }
 0x199   :  { %v1634_v34 = vpop.f32.mrb[0].mxu1  ;;  %v1781_v35 = vadd.f32 %v1563_v33, %v4610_v30  ;;  %v1824_v36 = vsel %vm1816_vm5, %v1563_v33, 1.0  ;;  %v1565_v37 = vpop.f32.mrb[21].mxu0 }
 0x19a   :  { %v1791_v8 = vadd.f32 %v1634_v34, %v40_v32  ;;  %v1636_v40 = vpop.f32.mrb[1].mxu1  ;;  %3378 = vlog2.f32 %v1824_v36  ;;  %v1782_v45 = vadd.f32 %v1565_v37, %v4614_v2 }
 0x19b   :  { %v1792_v27 = vadd.f32 %v1636_v40, %v40_v32  ;;  %v1789_v29 = vadd.f32 %v1781_v35, %v40_v32 }
 0x19c   :  { %v1890_v41 = vmul.f32 %v1863_v28, %v1791_v8  ;;  %v1790_v42 = vadd.f32 %v1782_v45, %v40_v32 }
 0x19d   :  { %v1891_v43 = vmul.f32 %v1863_v28, %v1792_v27 }
 0x19e   :  { %v1889_v44 = vmul.f32 %v1863_v28, %v1790_v42  ;;  %v2317_v11 = vrot.slane %v1890_v41, 7 }
 0x19f   :  { %v2318_v10 = vrot.slane %v1891_v43, 7 }
 0x1a0   :  { %v2316_v13 = vrot.slane %v1889_v44, 7 }
 0x1a4   :  { %v3379_v46 = vpop.eup %3378 }
 0x1a5   :  { %v1833_v47 = vmul.f32 0.6931472, %v3379_v46 }
 0x1a7   :  { %v1848_v48 = vmul.f32 0.006, %v1833_v47 }
 0x1a9   :  { %v1859_v57 = vrot.slane %v1848_v48, %v1858_v26 }
 0x1ab   :  { %v1888_v49 = vmul.f32 %v1859_v57, %v1789_v29 }
 0x1ad   :  { %v2315_v5 = vrot.slane %v1888_v49, 7 }
 0x1d8   :  { %v1705_v50 = vpop.f32.mrb[10].mxu0 }
 0x1d9   :  { %v1776_v30 = vpop.f32.mrb[10].mxu1  ;;  %v1793_v51 = vadd.f32 %v1705_v50, %v40_v32  ;;  %v1707_v60 = vpop.f32.mrb[11].mxu0 }
 0x1da   :  { %v1795_v52 = vadd.f32 %v1776_v30, %v40_v32  ;;  %v1778_v31 = vpop.f32.mrb[11].mxu1  ;;  %v1794_v53 = vadd.f32 %v1707_v60, %v40_v32 }
 0x1db   :  { %v1796_v54 = vadd.f32 %v1778_v31, %v40_v32  ;;  %v1892_v2 = vmul.f32 %v1863_v28, %v1793_v51 }
 0x1dc   :  { %v1894_v55 = vmul.f32 %v1863_v28, %v1795_v52  ;;  %v1893_v56 = vmul.f32 %v1863_v28, %v1794_v53 }
 0x1dd   :  { %v1895_v58 = vmul.f32 %v1863_v28, %v1796_v54  ;;  %v2319_v32 = vrot.slane %v1892_v2, 7 }
 0x1de   :  { %v2321_v28 = vrot.slane %v1894_v55, 7  ;;  %v2320_v8 = vrot.slane %v1893_v56, 7 }
 0x1df   :  { %v2322_v37 = vrot.slane %v1895_v58, 7 }
 0x207   :  { %v2030_v0 = vpop.f32.mrb[22].mxu0 }
 0x208   :  { %v2101_v1 = vpop.f32.mrb[20].mxu1  ;;  %v2031_v3 = vadd.f32 %v2030_v0, %v70_v63  ;;  %v2032_v7 = vpop.f32.mrb[23].mxu0 }
 0x209   :  { %v2102_v6 = vadd.f32 %v2101_v1, %v70_v63  ;;  %v2103_v9 = vpop.f32.mrb[21].mxu1  ;;  %v2033_v12 = vadd.f32 %v2032_v7, %v70_v63 }
 0x20a   :  { %v2104_v14 = vadd.f32 %v2103_v9, %v70_v63  ;;  %v2331_v15 = vadd.f32 %v2315_v5, %v2031_v3 }
 0x20b   :  { %v2333_v39 = vadd.f32 %v2317_v11, %v2102_v6  ;;  %v2256_v16 = vcombine.low %v2031_v3, %v2033_v12  ;;  %v2332_v17 = vadd.f32 %v2316_v13, %v2033_v12 }
 0x20c   :  { %v2257_v18 = vcombine.low %v2102_v6, %v2104_v14  ;;  %v2334_v19 = vadd.f32 %v2318_v10, %v2104_v14 }
 0x20d   :  { %v2266_v20 = vrot.slane %v2256_v16, %v2265_v38  ;;  %v2347_v21 = vcombine.low %v2331_v15, %v2332_v17 }
 0x20e   :  { %v2273_v22 = vrot.slane %v2257_v18, %v2265_v38  ;;  %v2348_v23 = vcombine.low %v2333_v39, %v2334_v19 }
 0x20f   :  { %2355 = vst [vmem:[%s4695_s8] sm:$0x66] %v2347_v21 }
 0x210   :  { %v2288_v4 = vcombine.low %v2266_v20, %v2273_v22  ;;  %2356 = vst [vmem:[%s4695_s8 + $0x8] sm:$0x66] %v2348_v23 }
 0x212   :  { %v2296_v24 = vrot.slane %v2288_v4, %v2265_v38 }
 0x247   :  { %v2172_v25 = vpop.f32.mrb[24].mxu0 }
 0x248   :  { %v2243_v26 = vpop.f32.mrb[22].mxu1  ;;  %v2173_v33 = vadd.f32 %v2172_v25, %v70_v63  ;;  %v2174_v35 = vpop.f32.mrb[25].mxu0 }
 0x249   :  { %v2244_v34 = vadd.f32 %v2243_v26, %v70_v63  ;;  %v2245_v36 = vpop.f32.mrb[23].mxu1  ;;  %v2175_v40 = vadd.f32 %v2174_v35, %v70_v63 }
 0x24a   :  { %v2246_v45 = vadd.f32 %v2245_v36, %v70_v63  ;;  %v2335_v27 = vadd.f32 %v2319_v32, %v2173_v33 }
 0x24b   :  { %v2337_v41 = vadd.f32 %v2321_v28, %v2244_v34  ;;  %v2258_v42 = vcombine.low %v2173_v33, %v2175_v40  ;;  %v2336_v43 = vadd.f32 %v2320_v8, %v2175_v40 }
 0x24c   :  { %v2259_v44 = vcombine.low %v2244_v34, %v2246_v45  ;;  %v2338_v46 = vadd.f32 %v2322_v37, %v2246_v45 }
 0x24d   :  { %v2280_v47 = vrot.slane %v2258_v42, %v2265_v38  ;;  %v2349_v48 = vcombine.low %v2335_v27, %v2336_v43 }
 0x24e   :  { %v2287_v29 = vrot.slane %v2259_v44, %v2265_v38  ;;  %v2350_v57 = vcombine.low %v2337_v41, %v2338_v46 }
 0x24f   :  { %2357 = vst [vmem:[%s4695_s8 + $0x10] sm:$0x66] %v2349_v48 }
 0x250   :  { %v2289_v49 = vcombine.low %v2280_v47, %v2287_v29  ;;  %2358 = vst [vmem:[%s4695_s8 + $0x18] sm:$0x66] %v2350_v57 }
 0x252   :  { %v2303_v50 = vrot.slane %v2289_v49, %v2265_v38 }
 0x254   :  { %v2304_v30 = vcombine.low %v2296_v24, %v2303_v50 }
 0x256   :  { %2306 = vst [vmem:[%s4695_s8] ss:$4 sm:$0xff] %v2304_v30 }

</bundles_post_ra>
